<compile_context>
chip_gen: v5e
topology: v5e:2x2
jax: 0.10.0
libtpu: 0.0.40
codegen_flags: <defaults>
</compile_context>

<pallas_src>
import jax
import jax.numpy as jnp
from jax import lax
from jax.experimental import pallas as pl
from jax.experimental.pallas import tpu as pltpu

_EPS = 1e-5
_LANES = 128


def _my_block_kernel(x_ref, w1_ref, t1_ref, w2_ref, t2_ref, w3_ref, t3_ref,
                     o_ref, pad_ref):
    # x_ref block: (NB, H, W, CP) f32, channels (CP) in the lane dim.
    NB, H, W, CP = x_ref.shape
    M = NB * H * W

    x = x_ref[...]
    x2d = x.reshape(M, CP)                      # layout-preserving when W % 8 == 0

    # ---- conv1 (1x1, BN scale pre-folded into weights) + shift + ReLU ------
    y1 = jnp.dot(x2d.astype(jnp.bfloat16), w1_ref[...],
                 preferred_element_type=jnp.float32)
    y1 = jnp.maximum(y1 + t1_ref[...], 0.0)     # (M, CP) f32

    # ---- conv2 (3x3, stride 1, pad 1) as ONE im2col matmul (K = 9*CP) ------
    # Zero only the halo border of the persistent padded scratch (the interior
    # is fully overwritten each step).  Done unconditionally so each megacore
    # core's private scratch is initialized.
    zrow = jnp.zeros((NB, 1, W + 2, CP), jnp.float32)
    zcol = jnp.zeros((NB, H, 1, CP), jnp.float32)
    pad_ref[:, 0:1, :, :] = zrow
    pad_ref[:, H + 1:H + 2, :, :] = zrow
    pad_ref[:, 1:H + 1, 0:1, :] = zcol
    pad_ref[:, 1:H + 1, W + 1:W + 2, :] = zcol
    pad_ref[:, 1:H + 1, 1:W + 1, :] = y1.reshape(NB, H, W, CP)

    # 9 shifted windows, concatenated along the lane-aligned channel axis.
    taps = [pad_ref[:, dy:dy + H, dx:dx + W, :].reshape(M, CP)
            for dy in range(3) for dx in range(3)]
    patches = jnp.concatenate(taps, axis=1)     # (M, 9*CP)
    y2 = jnp.dot(patches.astype(jnp.bfloat16), w2_ref[...],
                 preferred_element_type=jnp.float32)
    y2 = jnp.maximum(y2 + t2_ref[...], 0.0)

    # ---- conv3 (1x1) + shift + ReLU -----------------------------------------
    y3 = jnp.dot(y2.astype(jnp.bfloat16), w3_ref[...],
                 preferred_element_type=jnp.float32)
    y3 = jnp.maximum(y3 + t3_ref[...], 0.0)

    # ---- residual add (f32) + final ReLU ------------------------------------
    o_ref[...] = jnp.maximum(y3 + x2d, 0.0).reshape(NB, H, W, CP)


def my_block_forward(x_nchw, kparams):
    """x_nchw: (N, C, H, W) float32 (PyTorch convention)."""
    (w1, t1, w2, t2, w3, t3) = kparams
    N, C, H, W = x_nchw.shape
    CP = w1.shape[1]                            # lane-padded channel count

    x = jnp.transpose(x_nchw, (0, 2, 3, 1))     # NHWC: channels -> lanes
    if CP != C:
        x = jnp.pad(x, ((0, 0), (0, 0), (0, 0), (0, CP - C)))

    # Whole batch in one grid step at small N (per-step overhead dominates);
    # for larger even N split into two 'parallel' blocks for v7x megacore.
    NB = N // 2 if (N >= 4 and N % 2 == 0) else N
    grid = (N // NB,)

    def _full_spec(shape):
        ndim = len(shape)
        return pl.BlockSpec(shape, lambda n, _nd=ndim: (0,) * _nd)

    flops = 2 * N * H * W * 11 * CP * CP        # 1x1 + 3x3(im2col) + 1x1
    bytes_accessed = (2 * N * H * W * CP * 4    # input + output, f32
                      + 11 * CP * CP * 2        # bf16 weights (w1 + 9*CP w2 + w3)
                      + 3 * CP * 4)             # f32 shifts

    out_nhwc = pl.pallas_call(
        _my_block_kernel,
        out_shape=jax.ShapeDtypeStruct((N, H, W, CP), jnp.float32),
        grid_spec=pltpu.PrefetchScalarGridSpec(
            num_scalar_prefetch=0,
            grid=grid,
            in_specs=[
                pl.BlockSpec((NB, H, W, CP), lambda n: (n, 0, 0, 0)),
                _full_spec((CP, CP)), _full_spec((1, CP)),
                _full_spec((9 * CP, CP)), _full_spec((1, CP)),
                _full_spec((CP, CP)), _full_spec((1, CP)),
            ],
            out_specs=pl.BlockSpec((NB, H, W, CP), lambda n: (n, 0, 0, 0)),
            # Padded-y1 scratch (f32 keeps the misaligned halo slicing simple).
            scratch_shapes=[pltpu.VMEM((NB, H + 2, W + 2, CP), jnp.float32)],
        ),
        compiler_params=pltpu.CompilerParams(
            dimension_semantics=("parallel",)),
        cost_estimate=pl.CostEstimate(flops=flops, transcendentals=0,
                                      bytes_accessed=bytes_accessed),
    )(x, w1, t1, w2, t2, w3, t3)

    out = out_nhwc[..., :C] if CP != C else out_nhwc
    return jnp.transpose(out, (0, 3, 1, 2))     # back to NCHW


# ---------------- deterministic parameter setup (glue, plain JAX) -----------

def init_raw_params(key, C):
    keys = jax.random.split(key, 9)

    def conv_init(k, shape):
        kw, kb = jax.random.split(k)
        fan_in = shape[1] * shape[2] * shape[3]
        bound = 1.0 / (fan_in ** 0.5)
        w = jax.random.uniform(kw, shape, jnp.float32, -bound, bound)
        b = jax.random.uniform(kb, (shape[0],), jnp.float32, -bound, bound)
        return w, b

    def bn_init(k):
        k1, k2, k3, k4 = jax.random.split(k, 4)
        gamma = 1.0 + 0.1 * jax.random.normal(k1, (C,), jnp.float32)
        beta = 0.1 * jax.random.normal(k2, (C,), jnp.float32)
        mean = 0.1 * jax.random.normal(k3, (C,), jnp.float32)
        var = 1.0 + 0.1 * jax.random.uniform(k4, (C,), jnp.float32)
        return gamma, beta, mean, var

    w1, b1 = conv_init(keys[0], (C, C, 1, 1))
    w2, b2 = conv_init(keys[1], (C, C, 3, 3))
    w3, b3 = conv_init(keys[2], (C, C, 1, 1))
    return dict(w1=w1, b1=b1, bn1=bn_init(keys[3]),
                w2=w2, b2=b2, bn2=bn_init(keys[4]),
                w3=w3, b3=b3, bn3=bn_init(keys[5]))


def kernel_params(raw):
    """Fold eval-mode BN: scale goes into the conv weights (per out-channel),
    bias+BN shift becomes a per-channel add.  Channels are zero-padded to the
    128-lane width, the 3x3 kernel is flattened to the (9*CP, CP) im2col
    weight matrix, and weights are cast to bf16 for the MXU (shifts stay f32)."""
    C = raw['w1'].shape[0]
    CP = -(-C // _LANES) * _LANES

    def fold(bias, bn):
        gamma, beta, mean, var = bn
        scale = gamma / jnp.sqrt(var + _EPS)
        shift = beta + (bias - mean) * scale
        return scale, shift

    s1, t1 = fold(raw['b1'], raw['bn1'])
    s2, t2 = fold(raw['b2'], raw['bn2'])
    s3, t3 = fold(raw['b3'], raw['bn3'])

    pad2 = lambda m: jnp.pad(m, ((0, CP - C), (0, CP - C)))
    padv = lambda v: jnp.pad(v, (0, CP - C)).reshape(1, CP)

    # 1x1 convs: (Cout, Cin, 1, 1) -> (Cin, Cout), BN scale folded per column.
    w1 = pad2(jnp.transpose(raw['w1'][:, :, 0, 0]) * s1[None, :])
    w3 = pad2(jnp.transpose(raw['w3'][:, :, 0, 0]) * s3[None, :])
    # 3x3 conv: (Cout, Cin, 3, 3) -> (kh, kw, Cin, Cout), fold scale, pad
    # channels, flatten to im2col matrix matching tap order (dy, dx).
    w2 = jnp.transpose(raw['w2'], (2, 3, 1, 0)) * s2[None, None, None, :]
    w2 = jnp.pad(w2, ((0, 0), (0, 0), (0, CP - C), (0, CP - C)))
    w2 = w2.reshape(9 * CP, CP)

    return (w1.astype(jnp.bfloat16), padv(t1),
            w2.astype(jnp.bfloat16), padv(t2),
            w3.astype(jnp.bfloat16), padv(t3))


def reference(x_nchw, raw):
    """Pure-JAX f32 reference matching the PyTorch forward (eval-mode BN)."""
    def conv(x, w, b, pad):
        y = lax.conv_general_dilated(
            x, w, window_strides=(1, 1),
            padding=((pad, pad), (pad, pad)),
            dimension_numbers=('NCHW', 'OIHW', 'NCHW'))
        return y + b.reshape(1, -1, 1, 1)

    def bn(x, p):
        gamma, beta, mean, var = (v.reshape(1, -1, 1, 1) for v in p)
        return (x - mean) / jnp.sqrt(var + _EPS) * gamma + beta

    out = jax.nn.relu(bn(conv(x_nchw, raw['w1'], raw['b1'], 0), raw['bn1']))
    out = jax.nn.relu(bn(conv(out, raw['w2'], raw['b2'], 1), raw['bn2']))
    out = jax.nn.relu(bn(conv(out, raw['w3'], raw['b3'], 0), raw['bn3']))
    return jax.nn.relu(out + x_nchw)


if __name__ == "__main__":
    key = jax.random.PRNGKey(0)
    kx, kp = jax.random.split(key)
    N, C, H, W = 2, 8, 8, 8
    x = jax.random.normal(kx, (N, C, H, W), jnp.float32)
    raw = init_raw_params(kp, C)

    out = jax.block_until_ready(my_block_forward(x, kernel_params(raw)))
    ref = jax.block_until_ready(reference(x, raw))

    max_err = float(jnp.max(jnp.abs(out - ref)))
    assert out.shape == (N, C, H, W)
    # bf16 MXU operands (f32 accumulation) vs f32 reference -> relaxed tol.
    assert max_err < 5e-2, f"mismatch vs reference: {max_err}"
    print("KERNEL_OK")
</pallas_src>

<mosaic_0001>
module attributes {stable_mosaic.version = 11 : i64} {
  func.func @_my_block_kernel(%arg0: i32, %arg1: memref<2x8x8x128xf32, #tpu.memory_space<vmem>>, %arg2: memref<128x128xbf16, #tpu.memory_space<vmem>>, %arg3: memref<1x128xf32, #tpu.memory_space<vmem>>, %arg4: memref<1152x128xbf16, #tpu.memory_space<vmem>>, %arg5: memref<1x128xf32, #tpu.memory_space<vmem>>, %arg6: memref<128x128xbf16, #tpu.memory_space<vmem>>, %arg7: memref<1x128xf32, #tpu.memory_space<vmem>>, %arg8: memref<2x8x8x128xf32, #tpu.memory_space<vmem>>, %arg9: memref<2x10x10x128xf32, #tpu.memory_space<vmem>>) attributes {dimension_semantics = [#tpu.dimension_semantics<parallel>], iteration_bounds = array<i64: 1>, scalar_prefetch = 0 : i64, scratch_operands = 1 : i64, tpu.core_type = #tpu.core_type<tc>, window_params = [{transform_indices = @transform_0, window_bounds = array<i64: 2, 8, 8, 128>}, {pipeline_mode = #tpu.pipeline_mode<synchronous>, transform_indices = @transform_1, window_bounds = array<i64: 128, 128>}, {pipeline_mode = #tpu.pipeline_mode<synchronous>, transform_indices = @transform_2, window_bounds = array<i64: 1, 128>}, {pipeline_mode = #tpu.pipeline_mode<synchronous>, transform_indices = @transform_3, window_bounds = array<i64: 1152, 128>}, {pipeline_mode = #tpu.pipeline_mode<synchronous>, transform_indices = @transform_4, window_bounds = array<i64: 1, 128>}, {pipeline_mode = #tpu.pipeline_mode<synchronous>, transform_indices = @transform_5, window_bounds = array<i64: 128, 128>}, {pipeline_mode = #tpu.pipeline_mode<synchronous>, transform_indices = @transform_6, window_bounds = array<i64: 1, 128>}, {transform_indices = @transform_7, window_bounds = array<i64: 2, 8, 8, 128>}]} {
    %c0 = arith.constant 0 : index
    %c0_0 = arith.constant 0 : index
    %c0_1 = arith.constant 0 : index
    %c0_2 = arith.constant 0 : index
    %0 = vector.load %arg1[%c0, %c0_0, %c0_1, %c0_2] : memref<2x8x8x128xf32, #tpu.memory_space<vmem>>, vector<2x8x8x128xf32>
    %1 = vector.shape_cast %0 : vector<2x8x8x128xf32> to vector<128x128xf32>
    %2 = arith.truncf %1 : vector<128x128xf32> to vector<128x128xbf16>
    %c0_3 = arith.constant 0 : index
    %c0_4 = arith.constant 0 : index
    %3 = vector.load %arg2[%c0_3, %c0_4] : memref<128x128xbf16, #tpu.memory_space<vmem>>, vector<128x128xbf16>
    %cst = arith.constant dense<0.000000e+00> : vector<128x128xf32>
    %4 = tpu.matmul %2, %3, %cst {dimension_numbers = #tpu.dot_dimension_numbers<[1], [0], [0], [1], [0, 0, 1, 1], [], []>} : vector<128x128xbf16>, vector<128x128xbf16>, vector<128x128xf32> -> vector<128x128xf32>
    %c0_5 = arith.constant 0 : index
    %c0_6 = arith.constant 0 : index
    %5 = vector.load %arg3[%c0_5, %c0_6] : memref<1x128xf32, #tpu.memory_space<vmem>>, vector<1x128xf32>
    %6 = vector.broadcast %5 : vector<1x128xf32> to vector<128x128xf32>
    %7 = arith.addf %4, %6 : vector<128x128xf32>
    %cst_7 = arith.constant 0.000000e+00 : f32
    %8 = vector.broadcast %cst_7 : f32 to vector<128x128xf32>
    %9 = arith.maximumf %7, %8 : vector<128x128xf32>
    %cst_8 = arith.constant 0.000000e+00 : f32
    %10 = vector.broadcast %cst_8 : f32 to vector<2x1x10x128xf32>
    %cst_9 = arith.constant 0.000000e+00 : f32
    %11 = vector.broadcast %cst_9 : f32 to vector<2x8x1x128xf32>
    %c0_10 = arith.constant 0 : index
    %c0_11 = arith.constant 0 : index
    %c0_12 = arith.constant 0 : index
    %c0_13 = arith.constant 0 : index
    %12 = vector.load %arg9[%c0_10, %c0_11, %c0_12, %c0_13] : memref<2x10x10x128xf32, #tpu.memory_space<vmem>>, vector<2x1x10x128xf32>
    tpu.vector_store %arg9[%c0_10, %c0_11, %c0_12, %c0_13], %10 {strides = array<i32>} : memref<2x10x10x128xf32, #tpu.memory_space<vmem>>, vector<2x1x10x128xf32>,
    %c0_14 = arith.constant 0 : index
    %c9 = arith.constant 9 : index
    %c0_15 = arith.constant 0 : index
    %c0_16 = arith.constant 0 : index
    %13 = vector.load %arg9[%c0_14, %c9, %c0_15, %c0_16] : memref<2x10x10x128xf32, #tpu.memory_space<vmem>>, vector<2x1x10x128xf32>
    tpu.vector_store %arg9[%c0_14, %c9, %c0_15, %c0_16], %10 {strides = array<i32>} : memref<2x10x10x128xf32, #tpu.memory_space<vmem>>, vector<2x1x10x128xf32>,
    %c0_17 = arith.constant 0 : index
    %c1 = arith.constant 1 : index
    %c0_18 = arith.constant 0 : index
    %c0_19 = arith.constant 0 : index
    %14 = vector.load %arg9[%c0_17, %c1, %c0_18, %c0_19] : memref<2x10x10x128xf32, #tpu.memory_space<vmem>>, vector<2x8x1x128xf32>
    tpu.vector_store %arg9[%c0_17, %c1, %c0_18, %c0_19], %11 {strides = array<i32>} : memref<2x10x10x128xf32, #tpu.memory_space<vmem>>, vector<2x8x1x128xf32>,
    %c0_20 = arith.constant 0 : index
    %c1_21 = arith.constant 1 : index
    %c9_22 = arith.constant 9 : index
    %c0_23 = arith.constant 0 : index
    %15 = vector.load %arg9[%c0_20, %c1_21, %c9_22, %c0_23] : memref<2x10x10x128xf32, #tpu.memory_space<vmem>>, vector<2x8x1x128xf32>
    tpu.vector_store %arg9[%c0_20, %c1_21, %c9_22, %c0_23], %11 {strides = array<i32>} : memref<2x10x10x128xf32, #tpu.memory_space<vmem>>, vector<2x8x1x128xf32>,
    %16 = vector.shape_cast %9 : vector<128x128xf32> to vector<2x8x8x128xf32>
    %c0_24 = arith.constant 0 : index
    %c1_25 = arith.constant 1 : index
    %c1_26 = arith.constant 1 : index
    %c0_27 = arith.constant 0 : index
    %17 = vector.load %arg9[%c0_24, %c1_25, %c1_26, %c0_27] : memref<2x10x10x128xf32, #tpu.memory_space<vmem>>, vector<2x8x8x128xf32>
    tpu.vector_store %arg9[%c0_24, %c1_25, %c1_26, %c0_27], %16 {strides = array<i32>} : memref<2x10x10x128xf32, #tpu.memory_space<vmem>>, vector<2x8x8x128xf32>,
    %c0_28 = arith.constant 0 : index
    %c0_29 = arith.constant 0 : index
    %c0_30 = arith.constant 0 : index
    %c0_31 = arith.constant 0 : index
    %18 = vector.load %arg9[%c0_28, %c0_29, %c0_30, %c0_31] : memref<2x10x10x128xf32, #tpu.memory_space<vmem>>, vector<2x8x8x128xf32>
    %19 = vector.shape_cast %18 : vector<2x8x8x128xf32> to vector<128x128xf32>
    %c0_32 = arith.constant 0 : index
    %c0_33 = arith.constant 0 : index
    %c1_34 = arith.constant 1 : index
    %c0_35 = arith.constant 0 : index
    %20 = vector.load %arg9[%c0_32, %c0_33, %c1_34, %c0_35] : memref<2x10x10x128xf32, #tpu.memory_space<vmem>>, vector<2x8x8x128xf32>
    %21 = vector.shape_cast %20 : vector<2x8x8x128xf32> to vector<128x128xf32>
    %c0_36 = arith.constant 0 : index
    %c0_37 = arith.constant 0 : index
    %c2 = arith.constant 2 : index
    %c0_38 = arith.constant 0 : index
    %22 = vector.load %arg9[%c0_36, %c0_37, %c2, %c0_38] : memref<2x10x10x128xf32, #tpu.memory_space<vmem>>, vector<2x8x8x128xf32>
    %23 = vector.shape_cast %22 : vector<2x8x8x128xf32> to vector<128x128xf32>
    %c0_39 = arith.constant 0 : index
    %c1_40 = arith.constant 1 : index
    %c0_41 = arith.constant 0 : index
    %c0_42 = arith.constant 0 : index
    %24 = vector.load %arg9[%c0_39, %c1_40, %c0_41, %c0_42] : memref<2x10x10x128xf32, #tpu.memory_space<vmem>>, vector<2x8x8x128xf32>
    %25 = vector.shape_cast %24 : vector<2x8x8x128xf32> to vector<128x128xf32>
    %c0_43 = arith.constant 0 : index
    %c1_44 = arith.constant 1 : index
    %c1_45 = arith.constant 1 : index
    %c0_46 = arith.constant 0 : index
    %26 = vector.load %arg9[%c0_43, %c1_44, %c1_45, %c0_46] : memref<2x10x10x128xf32, #tpu.memory_space<vmem>>, vector<2x8x8x128xf32>
    %27 = vector.shape_cast %26 : vector<2x8x8x128xf32> to vector<128x128xf32>
    %c0_47 = arith.constant 0 : index
    %c1_48 = arith.constant 1 : index
    %c2_49 = arith.constant 2 : index
    %c0_50 = arith.constant 0 : index
    %28 = vector.load %arg9[%c0_47, %c1_48, %c2_49, %c0_50] : memref<2x10x10x128xf32, #tpu.memory_space<vmem>>, vector<2x8x8x128xf32>
    %29 = vector.shape_cast %28 : vector<2x8x8x128xf32> to vector<128x128xf32>
    %c0_51 = arith.constant 0 : index
    %c2_52 = arith.constant 2 : index
    %c0_53 = arith.constant 0 : index
    %c0_54 = arith.constant 0 : index
    %30 = vector.load %arg9[%c0_51, %c2_52, %c0_53, %c0_54] : memref<2x10x10x128xf32, #tpu.memory_space<vmem>>, vector<2x8x8x128xf32>
    %31 = vector.shape_cast %30 : vector<2x8x8x128xf32> to vector<128x128xf32>
    %c0_55 = arith.constant 0 : index
    %c2_56 = arith.constant 2 : index
    %c1_57 = arith.constant 1 : index
    %c0_58 = arith.constant 0 : index
    %32 = vector.load %arg9[%c0_55, %c2_56, %c1_57, %c0_58] : memref<2x10x10x128xf32, #tpu.memory_space<vmem>>, vector<2x8x8x128xf32>
    %33 = vector.shape_cast %32 : vector<2x8x8x128xf32> to vector<128x128xf32>
    %c0_59 = arith.constant 0 : index
    %c2_60 = arith.constant 2 : index
    %c2_61 = arith.constant 2 : index
    %c0_62 = arith.constant 0 : index
    %34 = vector.load %arg9[%c0_59, %c2_60, %c2_61, %c0_62] : memref<2x10x10x128xf32, #tpu.memory_space<vmem>>, vector<2x8x8x128xf32>
    %35 = vector.shape_cast %34 : vector<2x8x8x128xf32> to vector<128x128xf32>
    %36 = tpu.concatenate %19, %21, %23, %25, %27, %29, %31, %33, %35 in 1 : vector<128x128xf32>, vector<128x128xf32>, vector<128x128xf32>, vector<128x128xf32>, vector<128x128xf32>, vector<128x128xf32>, vector<128x128xf32>, vector<128x128xf32>, vector<128x128xf32> -> vector<128x1152xf32>
    %37 = arith.truncf %36 : vector<128x1152xf32> to vector<128x1152xbf16>
    %c0_63 = arith.constant 0 : index
    %c0_64 = arith.constant 0 : index
    %38 = vector.load %arg4[%c0_63, %c0_64] : memref<1152x128xbf16, #tpu.memory_space<vmem>>, vector<1152x128xbf16>
    %cst_65 = arith.constant dense<0.000000e+00> : vector<128x128xf32>
    %39 = tpu.matmul %37, %38, %cst_65 {dimension_numbers = #tpu.dot_dimension_numbers<[1], [0], [0], [1], [0, 0, 1, 1], [], []>} : vector<128x1152xbf16>, vector<1152x128xbf16>, vector<128x128xf32> -> vector<128x128xf32>
    %c0_66 = arith.constant 0 : index
    %c0_67 = arith.constant 0 : index
    %40 = vector.load %arg5[%c0_66, %c0_67] : memref<1x128xf32, #tpu.memory_space<vmem>>, vector<1x128xf32>
    %41 = vector.broadcast %40 : vector<1x128xf32> to vector<128x128xf32>
    %42 = arith.addf %39, %41 : vector<128x128xf32>
    %cst_68 = arith.constant 0.000000e+00 : f32
    %43 = vector.broadcast %cst_68 : f32 to vector<128x128xf32>
    %44 = arith.maximumf %42, %43 : vector<128x128xf32>
    %45 = arith.truncf %44 : vector<128x128xf32> to vector<128x128xbf16>
    %c0_69 = arith.constant 0 : index
    %c0_70 = arith.constant 0 : index
    %46 = vector.load %arg6[%c0_69, %c0_70] : memref<128x128xbf16, #tpu.memory_space<vmem>>, vector<128x128xbf16>
    %cst_71 = arith.constant dense<0.000000e+00> : vector<128x128xf32>
    %47 = tpu.matmul %45, %46, %cst_71 {dimension_numbers = #tpu.dot_dimension_numbers<[1], [0], [0], [1], [0, 0, 1, 1], [], []>} : vector<128x128xbf16>, vector<128x128xbf16>, vector<128x128xf32> -> vector<128x128xf32>
    %c0_72 = arith.constant 0 : index
    %c0_73 = arith.constant 0 : index
    %48 = vector.load %arg7[%c0_72, %c0_73] : memref<1x128xf32, #tpu.memory_space<vmem>>, vector<1x128xf32>
    %49 = vector.broadcast %48 : vector<1x128xf32> to vector<128x128xf32>
    %50 = arith.addf %47, %49 : vector<128x128xf32>
    %cst_74 = arith.constant 0.000000e+00 : f32
    %51 = vector.broadcast %cst_74 : f32 to vector<128x128xf32>
    %52 = arith.maximumf %50, %51 : vector<128x128xf32>
    %53 = arith.addf %52, %1 : vector<128x128xf32>
    %cst_75 = arith.constant 0.000000e+00 : f32
    %54 = vector.broadcast %cst_75 : f32 to vector<128x128xf32>
    %55 = arith.maximumf %53, %54 : vector<128x128xf32>
    %56 = vector.shape_cast %55 : vector<128x128xf32> to vector<2x8x8x128xf32>
    %c0_76 = arith.constant 0 : index
    %c0_77 = arith.constant 0 : index
    %c0_78 = arith.constant 0 : index
    %c0_79 = arith.constant 0 : index
    %57 = vector.load %arg8[%c0_76, %c0_77, %c0_78, %c0_79] : memref<2x8x8x128xf32, #tpu.memory_space<vmem>>, vector<2x8x8x128xf32>
    tpu.vector_store %arg8[%c0_76, %c0_77, %c0_78, %c0_79], %56 {strides = array<i32>} : memref<2x8x8x128xf32, #tpu.memory_space<vmem>>, vector<2x8x8x128xf32>,
    return
  }
  func.func @transform_0(%arg0: i32) -> (i32, i32, i32, i32) {
    %c0_i32 = arith.constant 0 : i32
    %c0_i32_0 = arith.constant 0 : i32
    %c0_i32_1 = arith.constant 0 : i32
    %c0_i32_2 = arith.constant 0 : i32
    return %arg0, %c0_i32, %c0_i32_0, %c0_i32_1 : i32, i32, i32, i32
  }
  func.func @transform_1(%arg0: i32) -> (i32, i32) {
    %c0_i32 = arith.constant 0 : i32
    %c0_i32_0 = arith.constant 0 : i32
    %c0_i32_1 = arith.constant 0 : i32
    return %c0_i32, %c0_i32_0 : i32, i32
  }
  func.func @transform_2(%arg0: i32) -> (i32, i32) {
    %c0_i32 = arith.constant 0 : i32
    %c0_i32_0 = arith.constant 0 : i32
    %c0_i32_1 = arith.constant 0 : i32
    return %c0_i32, %c0_i32_0 : i32, i32
  }
  func.func @transform_3(%arg0: i32) -> (i32, i32) {
    %c0_i32 = arith.constant 0 : i32
    %c0_i32_0 = arith.constant 0 : i32
    %c0_i32_1 = arith.constant 0 : i32
    return %c0_i32, %c0_i32_0 : i32, i32
  }
  func.func @transform_4(%arg0: i32) -> (i32, i32) {
    %c0_i32 = arith.constant 0 : i32
    %c0_i32_0 = arith.constant 0 : i32
    %c0_i32_1 = arith.constant 0 : i32
    return %c0_i32, %c0_i32_0 : i32, i32
  }
  func.func @transform_5(%arg0: i32) -> (i32, i32) {
    %c0_i32 = arith.constant 0 : i32
    %c0_i32_0 = arith.constant 0 : i32
    %c0_i32_1 = arith.constant 0 : i32
    return %c0_i32, %c0_i32_0 : i32, i32
  }
  func.func @transform_6(%arg0: i32) -> (i32, i32) {
    %c0_i32 = arith.constant 0 : i32
    %c0_i32_0 = arith.constant 0 : i32
    %c0_i32_1 = arith.constant 0 : i32
    return %c0_i32, %c0_i32_0 : i32, i32
  }
  func.func @transform_7(%arg0: i32) -> (i32, i32, i32, i32) {
    %c0_i32 = arith.constant 0 : i32
    %c0_i32_0 = arith.constant 0 : i32
    %c0_i32_1 = arith.constant 0 : i32
    %c0_i32_2 = arith.constant 0 : i32
    return %arg0, %c0_i32, %c0_i32_0, %c0_i32_1 : i32, i32, i32, i32
  }
}

</mosaic_0001>

<bundles_post_ra>
// kernel: tpu_custom_call.1
= control target key start
LH: loop header
LB: loop body
LE: loop exit
PB: predicated region body
PF: predicated region fallthrough
CT: control target
= control target key end

     0   :  { %12 = vsyncpa [#allocation4], 0  ;;  %s2938_s0 = inlined_call_operand.hbm [shape: f32[2,8,8,128], index: 0, kind: input, shape index: {}]   ;;  %s2939_s1 = inlined_call_operand.hbm [shape: bf16[128,128], index: 1, kind: input, shape index: {}]   ;;  %s2940_s2 = inlined_call_operand.vmem [shape: f32[1,128], index: 2, kind: input, shape index: {}]   ;;  %s2941_s3 = inlined_call_operand.hbm [shape: bf16[1152,128], index: 3, kind: input, shape index: {}]   ;;  %s2942_s4 = inlined_call_operand.vmem [shape: f32[1,128], index: 4, kind: input, shape index: {}]   ;;  %s2943_s5 = inlined_call_operand.hbm [shape: bf16[128,128], index: 5, kind: input, shape index: {}]   ;;  %s2944_s6 = inlined_call_operand.vmem [shape: f32[1,128], index: 6, kind: input, shape index: {}]   ;;  %s2945_s7 = inlined_call_operand.hbm [shape: f32[2,8,8,128], index: 7, kind: output, shape index: {}]  }
   0x1   :  { %13 = vsyncpa [#allocation7], 0 }
   0x2   :  { %14 = vsyncpa [#allocation10], 0  ;;  %s33_s26 = sshll.u32 %s2939_s1, 4  ;;  %s34_s26 = int_to_ptr.hbm [resolvable:$true] %s33_s26 }
   0x3   :  { %15 = vsyncpa [#allocation5], 0  ;;  %s2390_s27 = smov [#allocation6]   ;;  %s20_s8 = sshll.u32 %s2938_s0, 4  ;;  %s21_s8 = int_to_ptr.hbm [resolvable:$true] %s20_s8 }
   0x4   :  { %s35_s28 = sshll.u32 %s2390_s27, 4  ;;  %s2391_s9 = smov 64   ;;  %s36_s28 = int_to_ptr.vmem [resolvable:$true] %s35_s28 }
   0x5   :  { %s2392_s10 = smov 4   ;;  %s2393_s11 = smov [#allocation3]  }
   0x6   :  { %41 = dma.hbm_to_vmem [thread:$0]  %s34_s26, 1024, %s36_s28, [#allocation7], %s2391_s9, %s2391_s9, %s2392_s10  }
   0x7   :  { %s22_s12 = sshll.u32 %s2393_s11, 4  ;;  %s2394_s13 = smov 128   ;;  %s23_s12 = int_to_ptr.vmem [resolvable:$true] %s22_s12 }
   0x8   :  { %s2395_s14 = smov 8   ;;  %s48_s16 = sshll.u32 %s2941_s3, 4  ;;  %s49_s16 = int_to_ptr.hbm [resolvable:$true] %s48_s16 }
   0x9   :  { %28 = dma.hbm_to_vmem [thread:$0]  %s21_s8, 2048, %s23_s12, [#allocation4], %s2394_s13, %s2394_s13, %s2395_s14  }
   0xa   :  { %s2396_s17 = smov [#allocation8]   ;;  %s63_s20 = sshll.u32 %s2943_s5, 4  ;;  %s64_s20 = int_to_ptr.hbm [resolvable:$true] %s63_s20 }
   0xb   :  { %s50_s0 = sshll.u32 %s2396_s17, 4  ;;  %s2397_s21 = smov [#allocation9]   ;;  %s51_s0 = int_to_ptr.vmem [resolvable:$true] %s50_s0 }
   0xc   :  { %56 = dma.hbm_to_vmem [thread:$0]  %s49_s16, 9216, %s51_s0, [#allocation7], %s2391_s9, %s2391_s9, %s2392_s10  }
   0xd   :  { %s65_s22 = sshll.u32 %s2397_s21, 4  ;;  %s66_s22 = int_to_ptr.vmem [resolvable:$true] %s65_s22 }
   0xe   :  { %71 = dma.hbm_to_vmem [thread:$0]  %s64_s20, 1024, %s66_s22, [#allocation10], %s2391_s9, %s2391_s9, %s2392_s10  }
   0xf   :  { %2382 = dma.done.wait [#allocation4], 2048  }
  0x10   :  { %2383 = vsyncadd [#allocation4], 4294965248 }
  0x11   :  { %2384 = dma.done.wait [#allocation7], 10240  }
  0x12   :  { %2385 = vsyncadd [#allocation7], 4294957056 }
  0x13   :  { %2386 = dma.done.wait [#allocation10], 1024  }
  0x14   :  { %2387 = vsyncadd [#allocation10], 4294966272  ;;  %v2128_v0 = vld [vmem:[#allocation6 + $0x38] sm:$0xff]  ;;  %v2127_v1 = vld [vmem:[#allocation6 + $0x30] sm:$0xff]  ;;  %v2398_v40 = vmov 0.0   ;;  %s1754_s28 = sshll.u32 %s2945_s7, 4  ;;  %s1755_s28 = int_to_ptr.hbm [resolvable:$true] %s1754_s28 }
  0x15   :  { %182 = vmatpush.bf16.msra.mxu0 %v2128_v0  ;;  %2209 = vmatpush.bf16.msra.mxu3 %v2128_v0  ;;  %v2126_v2 = vld [vmem:[#allocation6 + $0x28] sm:$0xff]  ;;  %v2125_v3 = vld [vmem:[#allocation6 + $0x20] sm:$0xff]  ;;  %v2124_v4 = vld [vmem:[#allocation6 + $0x18] sm:$0xff]  ;;  %247 = vst [vmem:[#allocation2] sm:$0xff] %v2398_v40 }
  0x16   :  { %v2123_v5 = vld [vmem:[#allocation6 + $0x10] sm:$0xff]  ;;  %v2122_v6 = vld [vmem:[#allocation6 + $0x8] sm:$0xff]  ;;  %v2121_v7 = vld [vmem:[#allocation6] sm:$0xff]  ;;  %257 = vst [vmem:[#allocation2 + $0x10] sm:$0x1] %v2398_v40 }
  0x17   :  { %v90_v8 = vld [vmem:[#allocation3] sm:$0xff]  ;;  %v91_v9 = vld [vmem:[#allocation3 + $0x8] sm:$0xff]  ;;  %v92_v14 = vld [vmem:[#allocation3 + $0x10] sm:$0xff]  ;;  %248 = vst [vmem:[#allocation2 + $0x8] sm:$0x3] %v2398_v40 }
  0x18   :  { %v94_v10 = vld [vmem:[#allocation3 + $0x20] sm:$0xff]  ;;  %v95_v11 = vld [vmem:[#allocation3 + $0x28] sm:$0xff]  ;;  %v106_v12 = vpack.c.bf16 %v91_v9, %v90_v8  ;;  %v93_v15 = vld [vmem:[#allocation3 + $0x18] sm:$0xff]  ;;  %249 = vst [vmem:[#allocation2 + $0xa0] sm:$0xff] %v2398_v40 }
  0x19   :  { %183 = vmatpush.bf16.msra.mxu0 %v2127_v1  ;;  %2210 = vmatpush.bf16.msra.mxu3 %v2127_v1  ;;  %v108_v13 = vpack.c.bf16 %v95_v11, %v94_v10  ;;  %v96_v16 = vld [vmem:[#allocation3 + $0x30] sm:$0xff]  ;;  %v97_v17 = vld [vmem:[#allocation3 + $0x38] sm:$0xff]  ;;  %v107_v18 = vpack.c.bf16 %v93_v15, %v92_v14  ;;  %v98_v20 = vld [vmem:[#allocation3 + $0x40] sm:$0xff]  ;;  %250 = vst [vmem:[#allocation2 + $0xa8] sm:$0x3] %v2398_v40 }
  0x1a   :  { %v109_v19 = vpack.c.bf16 %v97_v17, %v96_v16  ;;  %v99_v21 = vld [vmem:[#allocation3 + $0x48] sm:$0xff]  ;;  %v100_v23 = vld [vmem:[#allocation3 + $0x50] sm:$0xff]  ;;  %v101_v24 = vld [vmem:[#allocation3 + $0x58] sm:$0xff]  ;;  %252 = vst [vmem:[#allocation2 + $0x90] sm:$0xff] %v2398_v40 }
  0x1b   :  { %v110_v22 = vpack.c.bf16 %v99_v21, %v98_v20  ;;  %v111_v25 = vpack.c.bf16 %v101_v24, %v100_v23  ;;  %v2136_v26 = vld [vmem:[#allocation8 + $0x38] sm:$0xff]  ;;  %v2135_v28 = vld [vmem:[#allocation8 + $0x30] sm:$0xff]  ;;  %v2134_v30 = vld [vmem:[#allocation8 + $0x28] sm:$0xff]  ;;  %253 = vst [vmem:[#allocation2 + $0x98] sm:$0x3] %v2398_v40 }
  0x1c   :  { %v2152_v27 = vld [vmem:[#allocation8 + $0xb8] sm:$0xff]  ;;  %v2151_v29 = vld [vmem:[#allocation8 + $0xb0] sm:$0xff]  ;;  %2217 = vmatpush.bf16.msra.mxu1 %v2136_v26  ;;  %v2150_v31 = vld [vmem:[#allocation8 + $0xa8] sm:$0xff]  ;;  %254 = vst [vmem:[#allocation2 + $0x130] sm:$0xff] %v2398_v40 }
  0x1d   :  { %184 = vmatpush.bf16.msra.mxu0 %v2126_v2  ;;  %2211 = vmatpush.bf16.msra.mxu3 %v2126_v2  ;;  %v102_v32 = vld [vmem:[#allocation3 + $0x60] sm:$0xff]  ;;  %v103_v33 = vld [vmem:[#allocation3 + $0x68] sm:$0xff]  ;;  %v104_v37 = vld [vmem:[#allocation3 + $0x70] sm:$0xff]  ;;  %255 = vst [vmem:[#allocation2 + $0x138] sm:$0x3] %v2398_v40 }
  0x1e   :  { %v2133_v34 = vld [vmem:[#allocation8 + $0x20] sm:$0xff]  ;;  %v112_v36 = vpack.c.bf16 %v103_v33, %v102_v32  ;;  %v105_v38 = vld [vmem:[#allocation3 + $0x78] sm:$0xff]  ;;  %v2131_v44 = vld [vmem:[#allocation8 + $0x10] sm:$0xff]  ;;  %258 = vst [vmem:[#allocation2 + $0x20] sm:$0x1] %v2398_v40 }
  0x1f   :  { %v2149_v35 = vld [vmem:[#allocation8 + $0xa0] sm:$0xff]  ;;  %v113_v39 = vpack.c.bf16 %v105_v38, %v104_v37  ;;  %v2132_v41 = vld [vmem:[#allocation8 + $0x18] sm:$0xff]  ;;  %v2147_v45 = vld [vmem:[#allocation8 + $0x90] sm:$0xff]  ;;  %259 = vst [vmem:[#allocation2 + $0x30] sm:$0x1] %v2398_v40 }
  0x20   :  { %2218 = vmatpush.bf16.msra.mxu1 %v2135_v28  ;;  %v2148_v42 = vld [vmem:[#allocation8 + $0x98] sm:$0xff]  ;;  %v2143_v46 = vld [vmem:[#allocation8 + $0x70] sm:$0xff]  ;;  %v2130_v47 = vld [vmem:[#allocation8 + $0x8] sm:$0xff]  ;;  %260 = vst [vmem:[#allocation2 + $0x40] sm:$0x1] %v2398_v40 }
  0x21   :  { %185 = vmatpush.bf16.msra.mxu0 %v2125_v3  ;;  %2212 = vmatpush.bf16.msra.mxu3 %v2125_v3  ;;  %v2144_v43 = vld [vmem:[#allocation8 + $0x78] sm:$0xff]  ;;  %v2146_v48 = vld [vmem:[#allocation8 + $0x88] sm:$0xff]  ;;  %261 = vst [vmem:[#allocation2 + $0x50] sm:$0x1] %v2398_v40  ;;  %v2129_v50 = vld [vmem:[#allocation8] sm:$0xff] }
  0x22   :  { %2225 = vmatpush.bf16.msra.mxu2 %v2144_v43  ;;  %v2142_v49 = vld [vmem:[#allocation8 + $0x68] sm:$0xff]  ;;  %v2145_v51 = vld [vmem:[#allocation8 + $0x80] sm:$0xff]  ;;  %262 = vst [vmem:[#allocation2 + $0x60] sm:$0x1] %v2398_v40  ;;  %v2140_v53 = vld [vmem:[#allocation8 + $0x58] sm:$0xff] }
  0x23   :  { %v2141_v52 = vld [vmem:[#allocation8 + $0x60] sm:$0xff]  ;;  %263 = vst [vmem:[#allocation2 + $0x70] sm:$0x1] %v2398_v40  ;;  %v2139_v54 = vld [vmem:[#allocation8 + $0x50] sm:$0xff]  ;;  %v2138_v55 = vld [vmem:[#allocation8 + $0x48] sm:$0xff] }
  0x24   :  { %2219 = vmatpush.bf16.msra.mxu1 %v2134_v30  ;;  %264 = vst [vmem:[#allocation2 + $0x80] sm:$0x1] %v2398_v40  ;;  %v2137_v56 = vld [vmem:[#allocation8 + $0x40] sm:$0xff]  ;;  %v2168_v63 = vld [vmem:[#allocation8 + $0x138] sm:$0xff]  ;;  %v2167_v17 = vld [vmem:[#allocation8 + $0x130] sm:$0xff] }
  0x25   :  { %186 = vmatpush.bf16.msra.mxu0 %v2124_v4  ;;  %2213 = vmatpush.bf16.msra.mxu3 %v2124_v4  ;;  %265 = vst [vmem:[#allocation2 + $0xb0] sm:$0x1] %v2398_v40  ;;  %v2490_v57 = vld [vmem:[%s2940_s2] ss:$0 sm:$0xff]  ;;  %v337_v3 = vld [vmem:[#allocation2 + $0x2] sm:$0xff] }
  0x26   :  { %2226 = vmatpush.bf16.msra.mxu2 %v2143_v46  ;;  %266 = vst [vmem:[#allocation2 + $0xc0] sm:$0x1] %v2398_v40  ;;  %v2158_v24 = vld [vmem:[#allocation8 + $0xe8] sm:$0xff] }
  0x27   :  { %267 = vst [vmem:[#allocation2 + $0xd0] sm:$0x1] %v2398_v40 }
  0x28   :  { %2220 = vmatpush.bf16.msra.mxu1 %v2133_v34  ;;  %268 = vst [vmem:[#allocation2 + $0xe0] sm:$0x1] %v2398_v40 }
  0x29   :  { %187 = vmatpush.bf16.msra.mxu0 %v2123_v5  ;;  %2214 = vmatpush.bf16.msra.mxu3 %v2123_v5  ;;  %269 = vst [vmem:[#allocation2 + $0xf0] sm:$0x1] %v2398_v40 }
  0x2a   :  { %2227 = vmatpush.bf16.msra.mxu2 %v2142_v49  ;;  %270 = vst [vmem:[#allocation2 + $0x100] sm:$0x1] %v2398_v40 }
  0x2b   :  { %271 = vst [vmem:[#allocation2 + $0x110] sm:$0x1] %v2398_v40 }
  0x2c   :  { %2221 = vmatpush.bf16.msra.mxu1 %v2132_v41  ;;  %272 = vst [vmem:[#allocation2 + $0x120] sm:$0x1] %v2398_v40 }
  0x2d   :  { %188 = vmatpush.bf16.msra.mxu0 %v2122_v6  ;;  %2215 = vmatpush.bf16.msra.mxu3 %v2122_v6  ;;  %273 = vst [vmem:[#allocation2 + $0x19] sm:$0x1] %v2398_v40 }
  0x2e   :  { %2228 = vmatpush.bf16.msra.mxu2 %v2141_v52  ;;  %274 = vst [vmem:[#allocation2 + $0x29] sm:$0x1] %v2398_v40 }
  0x2f   :  { %275 = vst [vmem:[#allocation2 + $0x39] sm:$0x1] %v2398_v40 }
  0x30   :  { %2222 = vmatpush.bf16.msra.mxu1 %v2131_v44  ;;  %276 = vst [vmem:[#allocation2 + $0x49] sm:$0x1] %v2398_v40 }
  0x31   :  { %189 = vmatpush.bf16.msra.mxu0 %v2121_v7  ;;  %2216 = vmatpush.bf16.msra.mxu3 %v2121_v7  ;;  %277 = vst [vmem:[#allocation2 + $0x59] sm:$0x1] %v2398_v40 }
  0x32   :  { %2229 = vmatpush.bf16.msra.mxu2 %v2140_v53  ;;  %278 = vst [vmem:[#allocation2 + $0x69] sm:$0x1] %v2398_v40 }
  0x33   :  { %279 = vst [vmem:[#allocation2 + $0x79] sm:$0x1] %v2398_v40 }
  0x34   :  { %190 = vmatmul.bf16.vlgmr.msra.gmra.mxu0 %v106_v12  ;;  %200 = vmatmul.bf16.vlgmr.msra.gmra.mxu3 %v108_v13  ;;  %280 = vst [vmem:[#allocation2 + $0x89] sm:$0x1] %v2398_v40  ;;  %v2160_v12 = vld [vmem:[#allocation8 + $0xf8] sm:$0xff] }
  0x35   :  { %1102 = vmatpush.bf16.msrb.mxu0 %v2136_v26  ;;  %1200 = vmatpush.bf16.msrb.mxu3 %v2152_v27  ;;  %281 = vst [vmem:[#allocation2 + $0xb9] sm:$0x1] %v2398_v40 }
  0x36   :  { %2223 = vmatpush.bf16.msra.mxu1 %v2130_v47  ;;  %2230 = vmatpush.bf16.msra.mxu2 %v2139_v54  ;;  %282 = vst [vmem:[#allocation2 + $0xc9] sm:$0x1] %v2398_v40 }
  0x37   :  { %283 = vst [vmem:[#allocation2 + $0xd9] sm:$0x1] %v2398_v40 }
  0x38   :  { %284 = vst [vmem:[#allocation2 + $0xe9] sm:$0x1] %v2398_v40 }
  0x39   :  { %1103 = vmatpush.bf16.msrb.mxu0 %v2135_v28  ;;  %1201 = vmatpush.bf16.msrb.mxu3 %v2151_v29  ;;  %285 = vst [vmem:[#allocation2 + $0xf9] sm:$0x1] %v2398_v40 }
  0x3a   :  { %2224 = vmatpush.bf16.msra.mxu1 %v2129_v50  ;;  %2231 = vmatpush.bf16.msra.mxu2 %v2138_v55  ;;  %286 = vst [vmem:[#allocation2 + $0x109] sm:$0x1] %v2398_v40 }
  0x3b   :  { %287 = vst [vmem:[#allocation2 + $0x119] sm:$0x1] %v2398_v40 }
  0x3c   :  { %288 = vst [vmem:[#allocation2 + $0x129] sm:$0x1] %v2398_v40 }
  0x3d   :  { %1104 = vmatpush.bf16.msrb.mxu0 %v2134_v30  ;;  %1202 = vmatpush.bf16.msrb.mxu3 %v2150_v31  ;;  %v2157_v31 = vld [vmem:[#allocation8 + $0xe0] sm:$0xff] }
  0x3e   :  { %2232 = vmatpush.bf16.msra.mxu2 %v2137_v56  ;;  %1298 = vmatpush.bf16.msrb.mxu1 %v2168_v63 }
  0x41   :  { %1105 = vmatpush.bf16.msrb.mxu0 %v2133_v34  ;;  %1203 = vmatpush.bf16.msrb.mxu3 %v2149_v35 }
  0x42   :  { %1299 = vmatpush.bf16.msrb.mxu1 %v2167_v17  ;;  %v2164_v17 = vld [vmem:[#allocation8 + $0x118] sm:$0xff] }
  0x44   :  { %195 = vmatmul.bf16.gmra.mxu0 %v107_v18  ;;  %205 = vmatmul.bf16.gmra.mxu3 %v109_v19  ;;  %v2159_v18 = vld [vmem:[#allocation8 + $0xf0] sm:$0xff] }
  0x45   :  { %1106 = vmatpush.bf16.msrb.mxu0 %v2132_v41  ;;  %1204 = vmatpush.bf16.msrb.mxu3 %v2148_v42 }
  0x49   :  { %1107 = vmatpush.bf16.msrb.mxu0 %v2131_v44  ;;  %1205 = vmatpush.bf16.msrb.mxu3 %v2147_v45  ;;  %v2156_v44 = vld [vmem:[#allocation8 + $0xd8] sm:$0xff] }
  0x4d   :  { %1108 = vmatpush.bf16.msrb.mxu0 %v2130_v47  ;;  %1206 = vmatpush.bf16.msrb.mxu3 %v2146_v48  ;;  %v2155_v47 = vld [vmem:[#allocation8 + $0xd0] sm:$0xff] }
  0x51   :  { %1109 = vmatpush.bf16.msrb.mxu0 %v2129_v50  ;;  %1207 = vmatpush.bf16.msrb.mxu3 %v2145_v51 }
  0x54   :  { %210 = vmatmul.bf16.gmra.mxu3 %v110_v22 }
  0x55   :  { %1151 = vmatpush.bf16.msra.mxu0 %v2144_v43  ;;  %v2166_v43 = vld [vmem:[#allocation8 + $0x128] sm:$0xff] }
  0x56   :  { %1300 = vmatpush.bf16.msrb.mxu1 %v2166_v43  ;;  %v2176_v43 = vld [vmem:[#allocation8 + $0x178] sm:$0xff] }
  0x57   :  { %1347 = vmatpush.bf16.msrb.mxu2 %v2176_v43 }
  0x59   :  { %1152 = vmatpush.bf16.msra.mxu0 %v2143_v46 }
  0x5d   :  { %1153 = vmatpush.bf16.msra.mxu0 %v2142_v49 }
  0x61   :  { %1154 = vmatpush.bf16.msra.mxu0 %v2141_v52 }
  0x64   :  { %215 = vmatmul.bf16.gmra.mxu3 %v111_v25 }
  0x65   :  { %1155 = vmatpush.bf16.msra.mxu0 %v2140_v53 }
  0x69   :  { %1156 = vmatpush.bf16.msra.mxu0 %v2139_v54 }
  0x6d   :  { %1157 = vmatpush.bf16.msra.mxu0 %v2138_v55  ;;  %v2154_v55 = vld [vmem:[#allocation8 + $0xc8] sm:$0xff] }
  0x71   :  { %1158 = vmatpush.bf16.msra.mxu0 %v2137_v56 }
  0x74   :  { %220 = vmatmul.bf16.gmra.mxu3 %v112_v36 }
  0x84   :  { %225 = vmatmul.bf16.gmra.mxu3 %v113_v39 }
  0xb1   :  { %v191_v58 = vpop.f32.mrf.mxu0 }
  0xb2   :  { %v192_v59 = vadd.f32 %v2490_v57, %v191_v58  ;;  %v321_v58 = vld [vmem:[#allocation2 + $0x1] sm:$0xff] }
  0xb4   :  { %v2499_v60 = vmax.f32 %v192_v59, 0.0  ;;  %v2165_v59 = vld [vmem:[#allocation8 + $0x120] sm:$0xff] }
  0xb5   :  { %1301 = vmatpush.bf16.msrb.mxu1 %v2165_v59  ;;  %v2174_v59 = vld [vmem:[#allocation8 + $0x168] sm:$0xff] }
  0xb6   :  { %289 = vst [vmem:[#allocation2 + $0x11] sm:$0xff] %v2499_v60 }
  0xb7   :  { %v201_v61 = vpop.f32.mrf.mxu3 }
  0xb8   :  { %v202_v62 = vadd.f32 %v2490_v57, %v201_v61  ;;  %v2153_v61 = vld [vmem:[#allocation8 + $0xc0] sm:$0xff] }
  0xb9   :  { %v193_v0 = vpop.f32.mrf.mxu0  ;;  %1302 = vmatpush.bf16.msrb.mxu1 %v2164_v17 }
  0xba   :  { %v194_v1 = vadd.f32 %v2490_v57, %v193_v0  ;;  %v2506_v2 = vmax.f32 %v202_v62, 0.0  ;;  %v451_v62 = vpack.c.bf16 %v2499_v60, %v321_v58 }
  0xbc   :  { %v2508_v4 = vmax.f32 %v194_v1, 0.0  ;;  %293 = vst [vmem:[#allocation2 + $0x51] sm:$0xff] %v2506_v2 }
  0xbd   :  { %v2511_v5 = vld [vmem:[#allocation2 + $0x10] sm:$0xff] }
  0xbe   :  { %v2513_v6 = vld [vmem:[#allocation2 + $0x12] sm:$0xff]  ;;  %290 = vst [vmem:[#allocation2 + $0x21] sm:$0xff] %v2508_v4  ;;  %v450_v7 = vpack.c.bf16 %v2511_v5, %v2398_v40  ;;  %v454_v9 = vpack.c.bf16 %v2508_v4, %v2499_v60  ;;  %v2197_v60 = vld [vmem:[#allocation8 + $0x220] sm:$0xff] }
  0xbf   :  { %v452_v8 = vpack.c.bf16 %v2513_v6, %v337_v3  ;;  %v203_v10 = vpop.f32.mrf.mxu3 }
  0xc0   :  { %1110 = vmatmul.bf16.vlgmr.msrb.gmra.mxu0 %v450_v7  ;;  %v204_v11 = vadd.f32 %v2490_v57, %v203_v10 }
  0xc1   :  { %1208 = vmatmul.bf16.vlgmr.msrb.gmra.mxu3 %v452_v8  ;;  %v196_v13 = vpop.f32.mrf.mxu0  ;;  %1249 = vmatpush.bf16.msrb.mxu0 %v2160_v12 }
  0xc2   :  { %v197_v14 = vadd.f32 %v2490_v57, %v196_v13  ;;  %v2523_v15 = vmax.f32 %v204_v11, 0.0 }
  0xc3   :  { %v2536_v26 = vld [vmem:[#allocation2 + $0x52] sm:$0xff] }
  0xc4   :  { %v2525_v16 = vmax.f32 %v197_v14, 0.0  ;;  %294 = vst [vmem:[#allocation2 + $0x61] sm:$0xff] %v2523_v15  ;;  %v472_v19 = vpack.c.bf16 %v2523_v15, %v2506_v2  ;;  %v2564_v46 = vld [vmem:[#allocation2 + $0x50] sm:$0xff] }
  0xc5   :  { %v2530_v20 = vld [vmem:[#allocation2 + $0x22] sm:$0xff]  ;;  %1250 = vmatpush.bf16.msrb.mxu0 %v2159_v18 }
  0xc6   :  { %291 = vst [vmem:[#allocation2 + $0x31] sm:$0xff] %v2525_v16  ;;  %v455_v21 = vpack.c.bf16 %v2530_v20, %v2513_v6  ;;  %v2545_v33 = vld [vmem:[#allocation2 + $0x20] sm:$0xff] }
  0xc7   :  { %v206_v22 = vpop.f32.mrf.mxu3 }
  0xc8   :  { %v207_v23 = vadd.f32 %v2490_v57, %v206_v22 }
  0xc9   :  { %v198_v25 = vpop.f32.mrf.mxu0  ;;  %1251 = vmatpush.bf16.msrb.mxu0 %v2158_v24 }
  0xca   :  { %v199_v27 = vadd.f32 %v2490_v57, %v198_v25  ;;  %v237_v28 = vmax.f32 %v207_v23, 0.0  ;;  %v329_v23 = vld [vmem:[#allocation2 + $0xa1] sm:$0xff] }
  0xcb   :  { %v2539_v29 = vld [vmem:[#allocation2 + $0x62] sm:$0xff] }
  0xcc   :  { %v2541_v30 = vmax.f32 %v199_v27, 0.0  ;;  %295 = vst [vmem:[#allocation2 + $0x71] sm:$0xff] %v237_v28  ;;  %v473_v32 = vpack.c.bf16 %v2539_v29, %v2536_v26  ;;  %v478_v1 = vpack.c.bf16 %v237_v28, %v2523_v15  ;;  %v2590_v8 = vld [vmem:[#allocation2 + $0x60] sm:$0xff] }
  0xcd   :  { %v2547_v34 = vld [vmem:[#allocation2 + $0x30] sm:$0xff]  ;;  %1252 = vmatpush.bf16.msrb.mxu0 %v2157_v31  ;;  %v460_v31 = vpack.c.bf16 %v2525_v16, %v2508_v4 }
  0xce   :  { %v2549_v35 = vld [vmem:[#allocation2 + $0x32] sm:$0xff]  ;;  %292 = vst [vmem:[#allocation2 + $0x41] sm:$0xff] %v2541_v30  ;;  %v2554_v36 = vpack.c.bf16 %v2547_v34, %v2545_v33  ;;  %v469_v38 = vpack.c.bf16 %v2506_v2, %v2541_v30  ;;  %v463_v41 = vpack.c.bf16 %v2541_v30, %v2525_v16  ;;  %v2739_v30 = vld [vmem:[%s2942_s4] ss:$0 sm:$0xff] }
  0xcf   :  { %v461_v37 = vpack.c.bf16 %v2549_v35, %v2530_v20  ;;  %v208_v39 = vpop.f32.mrf.mxu3 }
  0xd0   :  { %1115 = vmatmul.bf16.gmra.mxu0 %v2554_v36  ;;  %v209_v42 = vadd.f32 %v2490_v57, %v208_v39  ;;  %1169 = vmatmul.bf16.vlgmr.msra.gmra.mxu2 %v469_v38 }
  0xd1   :  { %1213 = vmatmul.bf16.gmra.mxu3 %v461_v37  ;;  %1253 = vmatpush.bf16.msrb.mxu0 %v2156_v44 }
  0xd2   :  { %v238_v45 = vmax.f32 %v209_v42, 0.0  ;;  %v2163_v42 = vld [vmem:[#allocation8 + $0x110] sm:$0xff] }
  0xd3   :  { %v2592_v10 = vld [vmem:[#allocation2 + $0x70] sm:$0xff]  ;;  %1303 = vmatpush.bf16.msrb.mxu1 %v2163_v42 }
  0xd4   :  { %296 = vst [vmem:[#allocation2 + $0x81] sm:$0xff] %v238_v45  ;;  %v2566_v48 = vpack.c.bf16 %v238_v45, %v237_v28  ;;  %v2599_v12 = vpack.c.bf16 %v2592_v10, %v2590_v8  ;;  %v2607_v24 = vld [vmem:[#allocation2 + $0x72] sm:$0xff] }
  0xd5   :  { %v2568_v49 = vld [vmem:[#allocation2 + $0x40] sm:$0xff]  ;;  %1254 = vmatpush.bf16.msrb.mxu0 %v2155_v47  ;;  %v479_v37 = vpack.c.bf16 %v2607_v24, %v2539_v29  ;;  %v2196_v29 = vld [vmem:[#allocation8 + $0x218] sm:$0xff] }
  0xd6   :  { %v2570_v50 = vld [vmem:[#allocation2 + $0x42] sm:$0xff]  ;;  %v2574_v51 = vpack.c.bf16 %v2564_v46, %v2568_v49 }
  0xd7   :  { %v464_v52 = vpack.c.bf16 %v2570_v50, %v2549_v35  ;;  %v211_v53 = vpop.f32.mrf.mxu3  ;;  %v470_v63 = vpack.c.bf16 %v2536_v26, %v2570_v50  ;;  %v2187_v50 = vld [vmem:[#allocation8 + $0x1d0] sm:$0xff] }
  0xd8   :  { %1120 = vmatmul.bf16.vlgmr.msra.gmra.mxu1 %v2574_v51  ;;  %v212_v54 = vadd.f32 %v2490_v57, %v211_v53  ;;  %v2175_v53 = vld [vmem:[#allocation8 + $0x170] sm:$0xff] }
  0xd9   :  { %1255 = vmatpush.bf16.msrb.mxu0 %v2154_v55  ;;  %1348 = vmatpush.bf16.msrb.mxu2 %v2175_v53 }
  0xda   :  { %v2580_v56 = vmax.f32 %v212_v54, 0.0 }
  0xdc   :  { %297 = vst [vmem:[#allocation2 + $0xb1] sm:$0xff] %v2580_v56  ;;  %v487_v28 = vpack.c.bf16 %v2580_v56, %v329_v23 }
  0xdd   :  { %1256 = vmatpush.bf16.msrb.mxu0 %v2153_v61  ;;  %1349 = vmatpush.bf16.msrb.mxu2 %v2174_v59  ;;  %v2161_v59 = vld [vmem:[#allocation8 + $0x100] sm:$0xff] }
  0xdf   :  { %v213_v0 = vpop.f32.mrf.mxu3 }
  0xe0   :  { %1159 = vmatmul.bf16.vlgmr.msra.gmra.mxu0 %v451_v62  ;;  %v214_v3 = vadd.f32 %v2490_v57, %v213_v0  ;;  %1174 = vmatmul.bf16.gmra.mxu2 %v478_v1  ;;  %v345_v62 = vld [vmem:[#allocation2 + $0xa2] sm:$0xff] }
  0xe1   :  { %1218 = vmatmul.bf16.gmra.mxu3 %v470_v63 }
  0xe2   :  { %v2588_v7 = vmax.f32 %v214_v3, 0.0 }
  0xe3   :  { %v2603_v18 = vld [vmem:[#allocation2 + $0xb2] sm:$0xff] }
  0xe4   :  { %298 = vst [vmem:[#allocation2 + $0xc1] sm:$0xff] %v2588_v7  ;;  %v490_v11 = vpack.c.bf16 %v2588_v7, %v2580_v56  ;;  %v2620_v44 = vld [vmem:[#allocation2 + $0xb0] sm:$0xff]  ;;  %v488_v3 = vpack.c.bf16 %v2603_v18, %v345_v62  ;;  %v2170_v62 = vld [vmem:[#allocation8 + $0x148] sm:$0xff] }
  0xe5   :  { %v486_v47 = vpack.c.bf16 %v2620_v44, %v2398_v40  ;;  %v2173_v40 = vld [vmem:[#allocation8 + $0x160] sm:$0xff] }
  0xe6   :  { %1350 = vmatpush.bf16.msrb.mxu2 %v2173_v40 }
  0xe7   :  { %v216_v13 = vpop.f32.mrf.mxu3 }
  0xe8   :  { %1125 = vmatmul.bf16.gmra.mxu1 %v2599_v12  ;;  %v217_v14 = vadd.f32 %v2490_v57, %v216_v13  ;;  %v453_v13 = vpack.c.bf16 %v2545_v33, %v2511_v5  ;;  %v2171_v33 = vld [vmem:[#allocation8 + $0x150] sm:$0xff] }
  0xea   :  { %v2605_v22 = vmax.f32 %v217_v14, 0.0 }
  0xeb   :  { %v2609_v25 = vld [vmem:[#allocation2 + $0xc2] sm:$0xff] }
  0xec   :  { %299 = vst [vmem:[#allocation2 + $0xd1] sm:$0xff] %v2605_v22  ;;  %v491_v27 = vpack.c.bf16 %v2609_v25, %v2603_v18  ;;  %v496_v17 = vpack.c.bf16 %v2605_v22, %v2588_v7  ;;  %v2647_v42 = vld [vmem:[#allocation2 + $0xc0] sm:$0xff] }
  0xef   :  { %v218_v38 = vpop.f32.mrf.mxu3 }
  0xf0   :  { %1164 = vmatmul.bf16.gmra.mxu0 %v460_v31  ;;  %v219_v39 = vadd.f32 %v2490_v57, %v218_v38  ;;  %1179 = vmatmul.bf16.gmra.mxu2 %v487_v28  ;;  %v2162_v28 = vld [vmem:[#allocation8 + $0x108] sm:$0xff]  ;;  %v2184_v31 = vld [vmem:[#allocation8 + $0x1b8] sm:$0xff] }
  0xf1   :  { %1223 = vmatmul.bf16.gmra.mxu3 %v479_v37  ;;  %v2172_v37 = vld [vmem:[#allocation8 + $0x158] sm:$0xff]  ;;  %1304 = vmatpush.bf16.msrb.mxu1 %v2162_v28 }
  0xf2   :  { %v2622_v45 = vmax.f32 %v219_v39, 0.0  ;;  %1396 = vmatpush.bf16.msra.mxu3 %v2184_v31  ;;  %v2183_v39 = vld [vmem:[#allocation8 + $0x1b0] sm:$0xff]  ;;  %1351 = vmatpush.bf16.msrb.mxu2 %v2172_v37  ;;  %v462_v31 = vpack.c.bf16 %v2568_v49, %v2547_v34 }
  0xf3   :  { %v2632_v63 = vld [vmem:[#allocation2 + $0xd2] sm:$0xff] }
  0xf4   :  { %300 = vst [vmem:[#allocation2 + $0xe1] sm:$0xff] %v2622_v45  ;;  %v499_v54 = vpack.c.bf16 %v2622_v45, %v2605_v22  ;;  %v2649_v5 = vld [vmem:[#allocation2 + $0xd0] sm:$0xff]  ;;  %v497_v28 = vpack.c.bf16 %v2632_v63, %v2609_v25  ;;  %v418_v25 = vld [vmem:[#allocation2 + $0x21] sm:$0xff] }
  0xf5   :  { %1305 = vmatpush.bf16.msrb.mxu1 %v2161_v59  ;;  %v2179_v59 = vld [vmem:[#allocation8 + $0x190] sm:$0xff] }
  0xf6   :  { %1397 = vmatpush.bf16.msra.mxu3 %v2183_v39  ;;  %1352 = vmatpush.bf16.msrb.mxu2 %v2171_v33 }
  0xf7   :  { %v221_v55 = vpop.f32.mrf.mxu3 }
  0xf8   :  { %1130 = vmatmul.bf16.gmra.mxu1 %v486_v47  ;;  %v222_v58 = vadd.f32 %v2490_v57, %v221_v55  ;;  %v2656_v47 = vpack.c.bf16 %v2649_v5, %v2647_v42 }
  0xfa   :  { %v2630_v61 = vmax.f32 %v222_v58, 0.0  ;;  %v2182_v58 = vld [vmem:[#allocation8 + $0x1a8] sm:$0xff]  ;;  %1353 = vmatpush.bf16.msrb.mxu2 %v2170_v62 }
  0xfb   :  { %v2634_v0 = vld [vmem:[#allocation2 + $0xe2] sm:$0xff]  ;;  %1398 = vmatpush.bf16.msra.mxu3 %v2182_v58 }
  0xfc   :  { %301 = vst [vmem:[#allocation2 + $0xf1] sm:$0xff] %v2630_v61  ;;  %v500_v1 = vpack.c.bf16 %v2634_v0, %v2632_v63  ;;  %v505_v37 = vpack.c.bf16 %v2630_v61, %v2622_v45  ;;  %v317_v62 = vld [vmem:[#allocation2 + $0xe0] sm:$0xff] }
  0xff   :  { %v223_v14 = vpop.f32.mrf.mxu3 }
 0x100   :  { %1257 = vmatmul.bf16.vlgmr.msrb.gmra.mxu0 %v453_v13  ;;  %v224_v23 = vadd.f32 %v2490_v57, %v223_v14  ;;  %1184 = vmatmul.bf16.gmra.mxu2 %v496_v17  ;;  %v2169_v17 = vld [vmem:[#allocation8 + $0x140] sm:$0xff] }
 0x101   :  { %1228 = vmatmul.bf16.gmra.mxu3 %v488_v3  ;;  %v2181_v3 = vld [vmem:[#allocation8 + $0x1a0] sm:$0xff]  ;;  %1354 = vmatpush.bf16.msrb.mxu2 %v2169_v17  ;;  %v2178_v17 = vld [vmem:[#allocation8 + $0x188] sm:$0xff] }
 0x102   :  { %v2645_v38 = vmax.f32 %v224_v23, 0.0  ;;  %1399 = vmatpush.bf16.msra.mxu3 %v2181_v3 }
 0x103   :  { %v2662_v13 = vld [vmem:[#allocation2 + $0xf2] sm:$0xff] }
 0x104   :  { %302 = vst [vmem:[#allocation2 + $0x101] sm:$0xff] %v2645_v38  ;;  %v508_v43 = vpack.c.bf16 %v2645_v38, %v2630_v61  ;;  %v2678_v34 = vld [vmem:[#allocation2 + $0xf0] sm:$0xff] }
 0x105   :  { %v2684_v3 = vpack.c.bf16 %v2678_v34, %v317_v62 }
 0x107   :  { %v226_v53 = vpop.f32.mrf.mxu3 }
 0x108   :  { %1135 = vmatmul.bf16.gmra.mxu1 %v2656_v47  ;;  %v227_v55 = vadd.f32 %v2490_v57, %v226_v53  ;;  %v2180_v53 = vld [vmem:[#allocation8 + $0x198] sm:$0xff] }
 0x109   :  { %1400 = vmatpush.bf16.msra.mxu3 %v2180_v53 }
 0x10a   :  { %v2660_v40 = vmax.f32 %v227_v55, 0.0  ;;  %v2192_v55 = vld [vmem:[#allocation8 + $0x1f8] sm:$0xff] }
 0x10b   :  { %v2664_v14 = vld [vmem:[#allocation2 + $0x102] sm:$0xff]  ;;  %1445 = vmatpush.bf16.msra.mxu0 %v2192_v55 }
 0x10c   :  { %303 = vst [vmem:[#allocation2 + $0x111] sm:$0xff] %v2660_v40  ;;  %v509_v23 = vpack.c.bf16 %v2664_v14, %v2662_v13 }
 0x10d   :  { %1401 = vmatpush.bf16.msra.mxu3 %v2179_v59  ;;  %v2191_v59 = vld [vmem:[#allocation8 + $0x1f0] sm:$0xff] }
 0x10f   :  { %v228_v39 = vpop.f32.mrf.mxu3  ;;  %1446 = vmatpush.bf16.msra.mxu0 %v2191_v59 }
 0x110   :  { %1262 = vmatmul.bf16.gmra.mxu0 %v462_v31  ;;  %v229_v33 = vadd.f32 %v2490_v57, %v228_v39  ;;  %1189 = vmatmul.bf16.gmra.mxu2 %v505_v37  ;;  %v2200_v57 = vld [vmem:[#allocation8 + $0x238] sm:$0xff]  ;;  %v506_v31 = vpack.c.bf16 %v2662_v13, %v2634_v0  ;;  %v471_v37 = vpack.c.bf16 %v2590_v8, %v2564_v46  ;;  %v2199_v46 = vld [vmem:[#allocation8 + $0x230] sm:$0xff] }
 0x111   :  { %1233 = vmatmul.bf16.gmra.mxu3 %v497_v28  ;;  %1494 = vmatpush.bf16.msra.mxu1 %v2200_v57  ;;  %v2177_v28 = vld [vmem:[#allocation8 + $0x180] sm:$0xff]  ;;  %v2693_v39 = vpack.c.bf16 %v2660_v40, %v2645_v38 }
 0x112   :  { %v2676_v58 = vmax.f32 %v229_v33, 0.0  ;;  %1402 = vmatpush.bf16.msra.mxu3 %v2178_v17  ;;  %v2696_v33 = vld [vmem:[#allocation2 + $0x100] sm:$0xff] }
 0x113   :  { %v2698_v53 = vld [vmem:[#allocation2 + $0x110] sm:$0xff]  ;;  %v2707_v57 = vld [vmem:[#allocation2 + $0x80] sm:$0xff]  ;;  %v507_v2 = vpack.c.bf16 %v2696_v33, %v2678_v34 }
 0x114   :  { %304 = vst [vmem:[#allocation2 + $0x121] sm:$0xff] %v2676_v58  ;;  %v517_v49 = vpack.c.bf16 %v2676_v58, %v2660_v40  ;;  %v2702_v55 = vpack.c.bf16 %v2698_v53, %v2696_v33  ;;  %v2705_v8 = vld [vmem:[#allocation2 + $0x112] sm:$0xff] }
 0x115   :  { %1495 = vmatpush.bf16.msra.mxu1 %v2199_v46  ;;  %v2711_v17 = vpack.c.bf16 %v2705_v8, %v2664_v14  ;;  %v489_v46 = vpack.c.bf16 %v2647_v42, %v2620_v44  ;;  %v422_v14 = vld [vmem:[#allocation2 + $0x61] sm:$0xff]  ;;  %v435_v40 = vld [vmem:[#allocation2 + $0x32] sm:$0xff] }
 0x116   :  { %1403 = vmatpush.bf16.msra.mxu3 %v2177_v28  ;;  %v480_v28 = vpack.c.bf16 %v2707_v57, %v2592_v10  ;;  %v498_v10 = vpack.c.bf16 %v317_v62, %v2649_v5 }
 0x118   :  { %1140 = vmatmul.bf16.gmra.mxu1 %v2684_v3 }
 0x120   :  { %1267 = vmatmul.bf16.gmra.mxu0 %v471_v37  ;;  %1194 = vmatmul.bf16.gmra.mxu2 %v2693_v39  ;;  %v2198_v37 = vld [vmem:[#allocation8 + $0x228] sm:$0xff] }
 0x121   :  { %1238 = vmatmul.bf16.gmra.mxu3 %v506_v31  ;;  %v2190_v31 = vld [vmem:[#allocation8 + $0x1e8] sm:$0xff]  ;;  %1496 = vmatpush.bf16.msra.mxu1 %v2198_v37 }
 0x122   :  { %1447 = vmatpush.bf16.msra.mxu0 %v2190_v31  ;;  %v2185_v31 = vld [vmem:[#allocation8 + $0x1c0] sm:$0xff] }
 0x125   :  { %1497 = vmatpush.bf16.msra.mxu1 %v2197_v60 }
 0x128   :  { %1145 = vmatmul.bf16.gmra.mxu1 %v2702_v55 }
 0x129   :  { %1498 = vmatpush.bf16.msra.mxu1 %v2196_v29 }
 0x130   :  { %1272 = vmatmul.bf16.gmra.mxu0 %v480_v28  ;;  %1355 = vmatmul.bf16.vlgmr.msrb.gmra.mxu2 %v455_v21  ;;  %v2189_v21 = vld [vmem:[#allocation8 + $0x1e0] sm:$0xff] }
 0x131   :  { %1243 = vmatmul.bf16.gmra.mxu3 %v2711_v17  ;;  %1448 = vmatpush.bf16.msra.mxu0 %v2189_v21  ;;  %v2746_v28 = vld [vmem:[#allocation2 + $0x82] sm:$0xff] }
 0x132   :  { %v482_v15 = vpack.c.bf16 %v2746_v28, %v2607_v24 }
 0x138   :  { %1306 = vmatmul.bf16.vlgmr.msrb.gmra.mxu1 %v454_v9 }
 0x13d   :  { %v1111_v59 = vpop.f32.mrf.mxu0 }
 0x13e   :  { %v1112_v5 = vadd.f32 %v2739_v30, %v1111_v59 }
 0x140   :  { %1277 = vmatmul.bf16.gmra.mxu0 %v489_v46  ;;  %1360 = vmatmul.bf16.gmra.mxu2 %v464_v52 }
 0x141   :  { %1404 = vmatmul.bf16.vlgmr.msra.gmra.mxu3 %v2554_v36  ;;  %v2188_v36 = vld [vmem:[#allocation8 + $0x1d8] sm:$0xff] }
 0x142   :  { %1449 = vmatpush.bf16.msra.mxu0 %v2188_v36 }
 0x144   :  { %v1209_v6 = vpop.f32.mrf.mxu3 }
 0x145   :  { %v1113_v20 = vpop.f32.mrf.mxu0 }
 0x146   :  { %1450 = vmatpush.bf16.msra.mxu0 %v2187_v50  ;;  %v1114_v36 = vadd.f32 %v2739_v30, %v1113_v20 }
 0x148   :  { %1311 = vmatmul.bf16.gmra.mxu1 %v463_v41 }
 0x14c   :  { %v1211_v4 = vpop.f32.mrf.mxu3 }
 0x14d   :  { %v1116_v9 = vpop.f32.mrf.mxu0 }
 0x150   :  { %1282 = vmatmul.bf16.gmra.mxu0 %v498_v10  ;;  %1365 = vmatmul.bf16.gmra.mxu2 %v473_v32  ;;  %v2186_v32 = vld [vmem:[#allocation8 + $0x1c8] sm:$0xff] }
 0x151   :  { %1409 = vmatmul.bf16.gmra.mxu3 %v2574_v51  ;;  %1451 = vmatpush.bf16.msra.mxu0 %v2186_v32  ;;  %v2195_v32 = vld [vmem:[#allocation8 + $0x210] sm:$0xff] }
 0x152   :  { %1499 = vmatpush.bf16.msra.mxu1 %v2195_v32 }
 0x153   :  { %v1170_v41 = vpop.f32.mrf.mxu2 }
 0x154   :  { %v1214_v35 = vpop.f32.mrf.mxu3 }
 0x155   :  { %v1118_v52 = vpop.f32.mrf.mxu0  ;;  %v1121_v44 = vpop.f32.mrf.mxu1  ;;  %1452 = vmatpush.bf16.msra.mxu0 %v2185_v31 }
 0x156   :  { %v1122_v42 = vadd.f32 %v2739_v30, %v1121_v44 }
 0x158   :  { %1316 = vmatmul.bf16.gmra.mxu1 %v472_v19  ;;  %v1171_v26 = vadd.f32 %v1170_v41, %v1122_v42 }
 0x15b   :  { %v1172_v62 = vpop.f32.mrf.mxu2 }
 0x15c   :  { %v1216_v51 = vpop.f32.mrf.mxu3 }
 0x15d   :  { %v1123_v37 = vpop.f32.mrf.mxu1  ;;  %v1160_v46 = vpop.f32.mrf.mxu0 }
 0x15e   :  { %v1124_v21 = vadd.f32 %v2739_v30, %v1123_v37  ;;  %v1161_v60 = vadd.f32 %v1160_v46, %v1112_v5  ;;  %v1117_v5 = vadd.f32 %v2739_v30, %v1116_v9 }
 0x160   :  { %1287 = vmatmul.bf16.gmra.mxu0 %v507_v2  ;;  %v1173_v19 = vadd.f32 %v1172_v62, %v1124_v21  ;;  %v1210_v59 = vadd.f32 %v1209_v6, %v1161_v60  ;;  %1370 = vmatmul.bf16.gmra.mxu2 %v482_v15  ;;  %v2759_v6 = vld [vmem:[#allocation2 + $0x120] sm:$0xff]  ;;  %v1119_v2 = vadd.f32 %v2739_v30, %v1118_v52 }
 0x161   :  { %1414 = vmatmul.bf16.gmra.mxu3 %v2599_v12 }
 0x163   :  { %v1175_v50 = vpop.f32.mrf.mxu2 }
 0x164   :  { %v1219_v10 = vpop.f32.mrf.mxu3 }
 0x165   :  { %v2755_v41 = vadd.f32 %v1219_v10, %v1171_v26  ;;  %v1126_v44 = vpop.f32.mrf.mxu1  ;;  %v1162_v42 = vpop.f32.mrf.mxu0 }
 0x166   :  { %v1127_v34 = vadd.f32 %v2739_v30, %v1126_v44  ;;  %v1163_v33 = vadd.f32 %v1162_v42, %v1114_v36  ;;  %v2194_v44 = vld [vmem:[#allocation8 + $0x208] sm:$0xff] }
 0x167   :  { %1500 = vmatpush.bf16.msra.mxu1 %v2194_v44 }
 0x168   :  { %1321 = vmatmul.bf16.gmra.mxu1 %v2566_v48  ;;  %v1176_v24 = vadd.f32 %v1175_v50, %v1127_v34  ;;  %v1212_v29 = vadd.f32 %v1211_v4, %v1163_v33  ;;  %v516_v48 = vpack.c.bf16 %v2759_v6, %v2698_v53  ;;  %v483_v4 = vpack.c.bf16 0.0, %v2707_v57 }
 0x16b   :  { %v1177_v26 = vpop.f32.mrf.mxu2 }
 0x16c   :  { %v1221_v12 = vpop.f32.mrf.mxu3 }
 0x16d   :  { %v2762_v20 = vadd.f32 %v1221_v12, %v1173_v19  ;;  %v1128_v62 = vpop.f32.mrf.mxu1  ;;  %v1165_v31 = vpop.f32.mrf.mxu0 }
 0x16e   :  { %v1129_v37 = vadd.f32 %v2739_v30, %v1128_v62  ;;  %v1166_v46 = vadd.f32 %v1165_v31, %v1117_v5 }
 0x170   :  { %1292 = vmatmul.bf16.gmra.mxu0 %v516_v48  ;;  %v1178_v21 = vadd.f32 %v1177_v26, %v1129_v37  ;;  %v1215_v60 = vadd.f32 %v1214_v35, %v1166_v46  ;;  %1375 = vmatmul.bf16.gmra.mxu2 %v491_v27  ;;  %v421_v26 = vld [vmem:[#allocation2 + $0x51] sm:$0xff] }
 0x171   :  { %1419 = vmatmul.bf16.gmra.mxu3 %v483_v4 }
 0x173   :  { %v1180_v19 = vpop.f32.mrf.mxu2 }
 0x174   :  { %v1224_v9 = vpop.f32.mrf.mxu3 }
 0x175   :  { %v2772_v15 = vadd.f32 %v1224_v9, %v1176_v24  ;;  %v1131_v10 = vpop.f32.mrf.mxu1  ;;  %v1167_v36 = vpop.f32.mrf.mxu0  ;;  %v457_v24 = vpack.c.bf16 %v2525_v16, %v418_v25  ;;  %v2208_v25 = vld [vmem:[#allocation9 + $0x38] sm:$0xff] }
 0x176   :  { %v1132_v53 = vadd.f32 %v2739_v30, %v1131_v10  ;;  %v1168_v50 = vadd.f32 %v1167_v36, %v1119_v2  ;;  %1635 = vmatpush.bf16.msra.mxu2 %v2208_v25 }
 0x178   :  { %1326 = vmatmul.bf16.gmra.mxu1 %v490_v11  ;;  %v1181_v57 = vadd.f32 %v1180_v19, %v1132_v53  ;;  %v1217_v35 = vadd.f32 %v1216_v51, %v1168_v50  ;;  %v2815_v53 = vld [vmem:[#allocation2 + $0x122] sm:$0xff] }
 0x179   :  { %v518_v38 = vpack.c.bf16 %v2815_v53, %v2705_v8 }
 0x17b   :  { %v1182_v52 = vpop.f32.mrf.mxu2 }
 0x17c   :  { %v1226_v18 = vpop.f32.mrf.mxu3 }
 0x17d   :  { %v2778_v27 = vadd.f32 %v1226_v18, %v1178_v21  ;;  %v1133_v42 = vpop.f32.mrf.mxu1  ;;  %v1258_v34 = vpop.f32.mrf.mxu0 }
 0x17e   :  { %v2780_v33 = vadd.f32 %v1258_v34, %v1210_v59  ;;  %v1134_v12 = vadd.f32 %v2739_v30, %v1133_v42 }
 0x180   :  { %1453 = vmatmul.bf16.vlgmr.msra.gmra.mxu0 %v457_v24  ;;  %1380 = vmatmul.bf16.gmra.mxu2 %v500_v1  ;;  %v1183_v63 = vadd.f32 %v1182_v52, %v1134_v12  ;;  %v420_v1 = vld [vmem:[#allocation2 + $0x41] sm:$0xff] }
 0x181   :  { %1424 = vmatmul.bf16.gmra.mxu3 %v2656_v47  ;;  %v2193_v47 = vld [vmem:[#allocation8 + $0x200] sm:$0xff] }
 0x182   :  { %1501 = vmatpush.bf16.msra.mxu1 %v2193_v47 }
 0x183   :  { %v1185_v11 = vpop.f32.mrf.mxu2 }
 0x184   :  { %v1229_v56 = vpop.f32.mrf.mxu3 }
 0x185   :  { %v2787_v7 = vadd.f32 %v1229_v56, %v1181_v57  ;;  %v1136_v51 = vpop.f32.mrf.mxu1  ;;  %v1260_v32 = vpop.f32.mrf.mxu0 }
 0x186   :  { %v1137_v59 = vadd.f32 %v2739_v30, %v1136_v51  ;;  %v2791_v5 = vadd.f32 %v1260_v32, %v1212_v29  ;;  %v466_v29 = vpack.c.bf16 %v421_v26, %v420_v1  ;;  %v424_v51 = vld [vmem:[#allocation2 + $0x81] sm:$0xff]  ;;  %v425_v32 = vld [vmem:[#allocation2 + $0x91] sm:$0xff] }
 0x187   :  { %v2207_v1 = vld [vmem:[#allocation9 + $0x30] sm:$0xff] }
 0x188   :  { %1331 = vmatmul.bf16.gmra.mxu1 %v499_v54  ;;  %v1186_v16 = vadd.f32 %v1185_v11, %v1137_v59  ;;  %1636 = vmatpush.bf16.msra.mxu2 %v2207_v1 }
 0x18b   :  { %v1187_v31 = vpop.f32.mrf.mxu2 }
 0x18c   :  { %v1231_v0 = vpop.f32.mrf.mxu3 }
 0x18d   :  { %v2796_v62 = vadd.f32 %v1231_v0, %v1183_v63  ;;  %v1138_v37 = vpop.f32.mrf.mxu1  ;;  %v1263_v46 = vpop.f32.mrf.mxu0  ;;  %v484_v63 = vpack.c.bf16 %v425_v32, %v424_v51  ;;  %v441_v32 = vld [vmem:[#allocation2 + $0x92] sm:$0xff] }
 0x18e   :  { %v2798_v48 = vadd.f32 %v1263_v46, %v1215_v60  ;;  %v1139_v9 = vadd.f32 %v2739_v30, %v1138_v37  ;;  %v434_v37 = vld [vmem:[#allocation2 + $0x22] sm:$0xff] }
 0x190   :  { %1458 = vmatmul.bf16.gmra.mxu0 %v466_v29  ;;  %1385 = vmatmul.bf16.gmra.mxu2 %v509_v23  ;;  %v1188_v19 = vadd.f32 %v1187_v31, %v1139_v9  ;;  %v423_v23 = vld [vmem:[#allocation2 + $0x71] sm:$0xff] }
 0x191   :  { %1429 = vmatmul.bf16.gmra.mxu3 %v2684_v3  ;;  %v427_v9 = vld [vmem:[#allocation2 + $0xd1] sm:$0xff] }
 0x193   :  { %v1190_v54 = vpop.f32.mrf.mxu2 }
 0x194   :  { %v1234_v22 = vpop.f32.mrf.mxu3 }
 0x195   :  { %v2804_v45 = vadd.f32 %v1234_v22, %v1186_v16  ;;  %v1141_v4 = vpop.f32.mrf.mxu1  ;;  %v1265_v21 = vpop.f32.mrf.mxu0  ;;  %v458_v22 = vpack.c.bf16 %v435_v40, %v434_v37 }
 0x196   :  { %v1142_v2 = vadd.f32 %v2739_v30, %v1141_v4  ;;  %v2808_v60 = vadd.f32 %v1265_v21, %v1217_v35  ;;  %v475_v35 = vpack.c.bf16 %v423_v23, %v422_v14  ;;  %v426_v21 = vld [vmem:[#allocation2 + $0xc1] sm:$0xff]  ;;  %v437_v14 = vld [vmem:[#allocation2 + $0x52] sm:$0xff] }
 0x197   :  { %v2206_v23 = vld [vmem:[#allocation9 + $0x28] sm:$0xff] }
 0x198   :  { %1336 = vmatmul.bf16.gmra.mxu1 %v508_v43  ;;  %v1191_v3 = vadd.f32 %v1190_v54, %v1142_v2  ;;  %1637 = vmatpush.bf16.msra.mxu2 %v2206_v23 }
 0x19b   :  { %v1192_v36 = vpop.f32.mrf.mxu2 }
 0x19c   :  { %v1236_v13 = vpop.f32.mrf.mxu3 }
 0x19d   :  { %v2813_v10 = vadd.f32 %v1236_v13, %v1188_v19  ;;  %v1143_v50 = vpop.f32.mrf.mxu1  ;;  %v1268_v57 = vpop.f32.mrf.mxu0 }
 0x19e   :  { %v2818_v44 = vadd.f32 %v1268_v57, %v2755_v41  ;;  %v1144_v34 = vadd.f32 %v2739_v30, %v1143_v50 }
 0x1a0   :  { %1463 = vmatmul.bf16.gmra.mxu0 %v475_v35  ;;  %1390 = vmatmul.bf16.gmra.mxu2 %v518_v38  ;;  %v1193_v8 = vadd.f32 %v1192_v36, %v1144_v34  ;;  %v438_v34 = vld [vmem:[#allocation2 + $0x62] sm:$0xff] }
 0x1a1   :  { %1434 = vmatmul.bf16.gmra.mxu3 %v2702_v55 }
 0x1a3   :  { %v1195_v56 = vpop.f32.mrf.mxu2 }
 0x1a4   :  { %v1239_v43 = vpop.f32.mrf.mxu3 }
 0x1a5   :  { %v2823_v18 = vadd.f32 %v1239_v43, %v1191_v3  ;;  %v1146_v52 = vpop.f32.mrf.mxu1  ;;  %v1270_v42 = vpop.f32.mrf.mxu0  ;;  %v428_v43 = vld [vmem:[#allocation2 + $0xe1] sm:$0xff] }
 0x1a6   :  { %v1147_v24 = vadd.f32 %v2739_v30, %v1146_v52  ;;  %v2828_v41 = vadd.f32 %v1270_v42, %v2762_v20  ;;  %v519_v20 = vpack.c.bf16 0.0, %v2759_v6  ;;  %v502_v42 = vpack.c.bf16 %v2630_v61, %v428_v43 }
 0x1a8   :  { %1341 = vmatmul.bf16.gmra.mxu1 %v517_v49  ;;  %v1196_v55 = vadd.f32 %v1195_v56, %v1147_v24  ;;  %v439_v24 = vld [vmem:[#allocation2 + $0x72] sm:$0xff] }
 0x1ab   :  { %v1197_v6 = vpop.f32.mrf.mxu2 }
 0x1ac   :  { %v1241_v11 = vpop.f32.mrf.mxu3 }
 0x1ad   :  { %v2833_v12 = vadd.f32 %v1241_v11, %v1193_v8  ;;  %v1148_v59 = vpop.f32.mrf.mxu1  ;;  %v1273_v16 = vpop.f32.mrf.mxu0  ;;  %v476_v11 = vpack.c.bf16 %v439_v24, %v438_v34 }
 0x1ae   :  { %v2836_v47 = vadd.f32 %v1273_v16, %v2772_v15  ;;  %v1149_v46 = vadd.f32 %v2739_v30, %v1148_v59  ;;  %v2204_v59 = vld [vmem:[#allocation9 + $0x18] sm:$0xff] }
 0x1b0   :  { %1468 = vmatmul.bf16.gmra.mxu0 %v484_v63  ;;  %v1198_v54 = vadd.f32 %v1197_v6, %v1149_v46  ;;  %v485_v63 = vpack.c.bf16 %v441_v32, %v2746_v28 }
 0x1b1   :  { %1439 = vmatmul.bf16.gmra.mxu3 %v519_v20 }
 0x1b4   :  { %v1244_v0 = vpop.f32.mrf.mxu3 }
 0x1b5   :  { %v2839_v49 = vadd.f32 %v1244_v0, %v1196_v55  ;;  %v1275_v26 = vpop.f32.mrf.mxu0  ;;  %v1307_v31 = vpop.f32.mrf.mxu1  ;;  %v433_v0 = vld [vmem:[#allocation2 + $0x131] sm:$0xff] }
 0x1b6   :  { %v1276_v29 = vadd.f32 %v1275_v26, %v2778_v27  ;;  %v2844_v15 = vadd.f32 %v1307_v31, %v2780_v33  ;;  %v493_v27 = vpack.c.bf16 %v427_v9, %v426_v21  ;;  %v436_v33 = vld [vmem:[#allocation2 + $0x42] sm:$0xff]  ;;  %v443_v31 = vld [vmem:[#allocation2 + $0xd2] sm:$0xff] }
 0x1b7   :  { %v467_v38 = vpack.c.bf16 %v437_v14, %v436_v33  ;;  %v442_v26 = vld [vmem:[#allocation2 + $0xc2] sm:$0xff] }
 0x1b8   :  { %1502 = vmatmul.bf16.vlgmr.msra.gmra.mxu1 %v458_v22  ;;  %v494_v28 = vpack.c.bf16 %v443_v31, %v442_v26  ;;  %v2201_v33 = vld [vmem:[#allocation9] sm:$0xff] }
 0x1bc   :  { %v1246_v4 = vpop.f32.mrf.mxu3 }
 0x1bd   :  { %v1247_v2 = vadd.f32 %v1246_v4, %v1198_v54  ;;  %v1278_v3 = vpop.f32.mrf.mxu0  ;;  %v1309_v19 = vpop.f32.mrf.mxu1  ;;  %v2202_v4 = vld [vmem:[#allocation9 + $0x8] sm:$0xff] }
 0x1be   :  { %v1279_v13 = vadd.f32 %v1278_v3, %v2787_v7  ;;  %v2848_v30 = vadd.f32 %v1309_v19, %v2791_v5 }
 0x1c0   :  { %1473 = vmatmul.bf16.gmra.mxu0 %v493_v27 }
 0x1c5   :  { %v1280_v36 = vpop.f32.mrf.mxu0  ;;  %v1312_v50 = vpop.f32.mrf.mxu1 }
 0x1c6   :  { %v1281_v57 = vadd.f32 %v1280_v36, %v2796_v62  ;;  %v2852_v35 = vadd.f32 %v1312_v50, %v2798_v48  ;;  %v2205_v62 = vld [vmem:[#allocation9 + $0x20] sm:$0xff] }
 0x1c7   :  { %1638 = vmatpush.bf16.msra.mxu2 %v2205_v62 }
 0x1c8   :  { %1507 = vmatmul.bf16.gmra.mxu1 %v467_v38 }
 0x1cb   :  { %1639 = vmatpush.bf16.msra.mxu2 %v2204_v59 }
 0x1cd   :  { %v1283_v7 = vpop.f32.mrf.mxu0  ;;  %v1314_v25 = vpop.f32.mrf.mxu1 }
 0x1ce   :  { %v1284_v5 = vadd.f32 %v1283_v7, %v2804_v45  ;;  %v2856_v52 = vadd.f32 %v1314_v25, %v2808_v60  ;;  %v449_v7 = vld [vmem:[#allocation2 + $0x132] sm:$0xff] }
 0x1cf   :  { %v521_v24 = vpack.c.bf16 %v449_v7, %v2815_v53 }
 0x1d0   :  { %1478 = vmatmul.bf16.gmra.mxu0 %v502_v42 }
 0x1d5   :  { %v1285_v56 = vpop.f32.mrf.mxu0  ;;  %v1317_v48 = vpop.f32.mrf.mxu1 }
 0x1d6   :  { %v1286_v55 = vadd.f32 %v1285_v56, %v2813_v10  ;;  %v2861_v8 = vadd.f32 %v1317_v48, %v2818_v44 }
 0x1d8   :  { %1512 = vmatmul.bf16.gmra.mxu1 %v476_v11 }
 0x1dd   :  { %v1288_v45 = vpop.f32.mrf.mxu0  ;;  %v1319_v51 = vpop.f32.mrf.mxu1 }
 0x1de   :  { %v1289_v60 = vadd.f32 %v1288_v45, %v2823_v18  ;;  %v2865_v61 = vadd.f32 %v1319_v51, %v2828_v41 }
 0x1e0   :  { %1483 = vmatmul.bf16.gmra.mxu0 %v2693_v39  ;;  %v520_v39 = vpack.c.bf16 %v433_v0, %v2676_v58 }
 0x1e5   :  { %v1290_v16 = vpop.f32.mrf.mxu0  ;;  %v1322_v20 = vpop.f32.mrf.mxu1 }
 0x1e6   :  { %v1291_v10 = vadd.f32 %v1290_v16, %v2833_v12  ;;  %v2870_v44 = vadd.f32 %v1322_v20, %v2836_v47  ;;  %v2203_v12 = vld [vmem:[#allocation9 + $0x10] sm:$0xff] }
 0x1e7   :  { %1640 = vmatpush.bf16.msra.mxu2 %v2203_v12 }
 0x1e8   :  { %1517 = vmatmul.bf16.gmra.mxu1 %v485_v63 }
 0x1eb   :  { %1641 = vmatpush.bf16.msra.mxu2 %v2202_v4 }
 0x1ed   :  { %v1293_v18 = vpop.f32.mrf.mxu0  ;;  %v1324_v40 = vpop.f32.mrf.mxu1 }
 0x1ee   :  { %v1294_v41 = vadd.f32 %v1293_v18, %v2839_v49  ;;  %v2874_v1 = vadd.f32 %v1324_v40, %v1276_v29  ;;  %v444_v49 = vld [vmem:[#allocation2 + $0xe2] sm:$0xff]  ;;  %v445_v29 = vld [vmem:[#allocation2 + $0xf2] sm:$0xff] }
 0x1ef   :  { %v503_v9 = vpack.c.bf16 %v445_v29, %v444_v49  ;;  %1642 = vmatpush.bf16.msra.mxu2 %v2201_v33 }
 0x1f0   :  { %1488 = vmatmul.bf16.gmra.mxu0 %v520_v39 }
 0x1f5   :  { %v1295_v37 = vpop.f32.mrf.mxu0  ;;  %v1327_v47 = vpop.f32.mrf.mxu1 }
 0x1f6   :  { %v1296_v46 = vadd.f32 %v1295_v37, %v1247_v2  ;;  %v2877_v22 = vadd.f32 %v1327_v47, %v1279_v13  ;;  %v1356_v2 = vpop.f32.mrf.mxu2  ;;  %v1405_v13 = vpop.f32.mrf.mxu3 }
 0x1f7   :  { %v1357_v51 = vadd.f32 %v1356_v2, %v2844_v15 }
 0x1f8   :  { %1522 = vmatmul.bf16.gmra.mxu1 %v494_v28 }
 0x1f9   :  { %v1406_v32 = vadd.f32 %v1405_v13, %v1357_v51 }
 0x1fd   :  { %v1329_v6 = vpop.f32.mrf.mxu1  ;;  %v1454_v27 = vpop.f32.mrf.mxu0 }
 0x1fe   :  { %v2879_v54 = vadd.f32 %v1329_v6, %v1281_v57  ;;  %v1358_v36 = vpop.f32.mrf.mxu2  ;;  %v1407_v50 = vpop.f32.mrf.mxu3 }
 0x205   :  { %v1332_v21 = vpop.f32.mrf.mxu1  ;;  %v1456_v57 = vpop.f32.mrf.mxu0 }
 0x206   :  { %v2881_v58 = vadd.f32 %v1332_v21, %v1284_v5  ;;  %v1361_v25 = vpop.f32.mrf.mxu2  ;;  %v1410_v5 = vpop.f32.mrf.mxu3 }
 0x208   :  { %1527 = vmatmul.bf16.gmra.mxu1 %v503_v9 }
 0x20d   :  { %v1334_v3 = vpop.f32.mrf.mxu1  ;;  %v1459_v62 = vpop.f32.mrf.mxu0 }
 0x20e   :  { %v2883_v19 = vadd.f32 %v1334_v3, %v1286_v55  ;;  %v1363_v48 = vpop.f32.mrf.mxu2 }
 0x20f   :  { %v1364_v47 = vadd.f32 %v1363_v48, %v2856_v52 }
 0x215   :  { %v1337_v14 = vpop.f32.mrf.mxu1  ;;  %v1461_v11 = vpop.f32.mrf.mxu0 }
 0x216   :  { %v2885_v23 = vadd.f32 %v1337_v14, %v1289_v60  ;;  %v1359_v60 = vadd.f32 %v1358_v36, %v2848_v30  ;;  %v1366_v59 = vpop.f32.mrf.mxu2  ;;  %v1362_v30 = vadd.f32 %v1361_v25, %v2852_v35 }
 0x217   :  { %v1367_v36 = vadd.f32 %v1366_v59, %v2861_v8 }
 0x218   :  { %1532 = vmatmul.bf16.gmra.mxu1 %v2711_v17  ;;  %v1412_v17 = vpop.f32.mrf.mxu3  ;;  %v1408_v20 = vadd.f32 %v1407_v50, %v1359_v60 }
 0x219   :  { %v1413_v28 = vadd.f32 %v1412_v17, %v1364_v47 }
 0x21a   :  { %v1457_v53 = vadd.f32 %v1456_v57, %v1408_v20 }
 0x21b   :  { %v1462_v29 = vadd.f32 %v1461_v11, %v1413_v28 }
 0x21d   :  { %v1339_v38 = vpop.f32.mrf.mxu1  ;;  %v1464_v63 = vpop.f32.mrf.mxu0 }
 0x21e   :  { %v2888_v43 = vadd.f32 %v1339_v38, %v1291_v10  ;;  %v1455_v10 = vadd.f32 %v1454_v27, %v1406_v32  ;;  %v1368_v26 = vpop.f32.mrf.mxu2 }
 0x21f   :  { %v1369_v52 = vadd.f32 %v1368_v26, %v2865_v61 }
 0x220   :  { %v1415_v16 = vpop.f32.mrf.mxu3 }
 0x221   :  { %v1416_v57 = vadd.f32 %v1415_v16, %v1367_v36 }
 0x223   :  { %v1465_v25 = vadd.f32 %v1464_v63, %v1416_v57 }
 0x225   :  { %v1342_v42 = vpop.f32.mrf.mxu1  ;;  %v1466_v37 = vpop.f32.mrf.mxu0 }
 0x226   :  { %v2890_v34 = vadd.f32 %v1342_v42, %v1294_v41  ;;  %v1371_v49 = vpop.f32.mrf.mxu2 }
 0x227   :  { %v1372_v60 = vadd.f32 %v1371_v49, %v2870_v44 }
 0x228   :  { %1537 = vmatmul.bf16.gmra.mxu1 %v521_v24  ;;  %v1417_v12 = vpop.f32.mrf.mxu3 }
 0x229   :  { %v1418_v7 = vadd.f32 %v1417_v12, %v1369_v52 }
 0x22d   :  { %v1344_v56 = vpop.f32.mrf.mxu1  ;;  %v1469_v2 = vpop.f32.mrf.mxu0 }
 0x22e   :  { %v2893_v55 = vadd.f32 %v1344_v56, %v1296_v46  ;;  %v1411_v46 = vadd.f32 %v1410_v5, %v1362_v30  ;;  %v1373_v35 = vpop.f32.mrf.mxu2  ;;  %v1467_v5 = vadd.f32 %v1466_v37, %v1418_v7 }
 0x22f   :  { %v1374_v61 = vadd.f32 %v1373_v35, %v2874_v1 }
 0x230   :  { %v1460_v6 = vadd.f32 %v1459_v62, %v1411_v46  ;;  %v1420_v21 = vpop.f32.mrf.mxu3 }
 0x231   :  { %v1421_v32 = vadd.f32 %v1420_v21, %v1372_v60 }
 0x233   :  { %v1470_v20 = vadd.f32 %v1469_v2, %v1421_v32 }
 0x235   :  { %v1503_v45 = vpop.f32.mrf.mxu1  ;;  %v1471_v38 = vpop.f32.mrf.mxu0 }
 0x236   :  { %v1504_v0 = vadd.f32 %v1503_v45, %v1455_v10  ;;  %v1376_v56 = vpop.f32.mrf.mxu2 }
 0x237   :  { %v1377_v44 = vadd.f32 %v1376_v56, %v2877_v22 }
 0x238   :  { %v1543_v41 = vmax.f32 %v1504_v0, 0.0  ;;  %v1422_v50 = vpop.f32.mrf.mxu3 }
 0x239   :  { %v1423_v59 = vadd.f32 %v1422_v50, %v1374_v61 }
 0x23b   :  { %v1472_v63 = vadd.f32 %v1471_v38, %v1423_v59 }
 0x23d   :  { %v1505_v18 = vpop.f32.mrf.mxu1  ;;  %v1474_v51 = vpop.f32.mrf.mxu0 }
 0x23e   :  { %v1506_v40 = vadd.f32 %v1505_v18, %v1457_v53  ;;  %v1378_v16 = vpop.f32.mrf.mxu2 }
 0x240   :  { %v1544_v39 = vmax.f32 %v1506_v40, 0.0  ;;  %v1425_v11 = vpop.f32.mrf.mxu3 }
 0x241   :  { %v1426_v30 = vadd.f32 %v1425_v11, %v1377_v44 }
 0x242   :  { %v1559_v31 = vpack.c.bf16 %v1544_v39, %v1543_v41 }
 0x243   :  { %v1475_v46 = vadd.f32 %v1474_v51, %v1426_v30 }
 0x244   :  { %1643 = vmatmul.bf16.vlgmr.msra.gmra.mxu2 %v1559_v31 }
 0x245   :  { %v1508_v15 = vpop.f32.mrf.mxu1  ;;  %v1476_v0 = vpop.f32.mrf.mxu0 }
 0x246   :  { %v1509_v4 = vadd.f32 %v1508_v15, %v1460_v6  ;;  %v1381_v31 = vpop.f32.mrf.mxu2  ;;  %v1379_v15 = vadd.f32 %v1378_v16, %v2879_v54 }
 0x247   :  { %v1382_v22 = vadd.f32 %v1381_v31, %v2881_v58 }
 0x248   :  { %v1545_v13 = vmax.f32 %v1509_v4, 0.0  ;;  %v1427_v10 = vpop.f32.mrf.mxu3 }
 0x249   :  { %v1428_v47 = vadd.f32 %v1427_v10, %v1379_v15 }
 0x24b   :  { %v1477_v28 = vadd.f32 %v1476_v0, %v1428_v47 }
 0x24d   :  { %v1510_v9 = vpop.f32.mrf.mxu1  ;;  %v1479_v1 = vpop.f32.mrf.mxu0 }
 0x24e   :  { %v1511_v3 = vadd.f32 %v1510_v9, %v1462_v29  ;;  %v1383_v29 = vpop.f32.mrf.mxu2 }
 0x250   :  { %v1546_v27 = vmax.f32 %v1511_v3, 0.0  ;;  %v1430_v12 = vpop.f32.mrf.mxu3 }
 0x251   :  { %v1431_v54 = vadd.f32 %v1430_v12, %v1382_v22 }
 0x252   :  { %v1560_v33 = vpack.c.bf16 %v1546_v27, %v1545_v13 }
 0x253   :  { %v1480_v50 = vadd.f32 %v1479_v1, %v1431_v54  ;;  %v2248_v54 = vld [vmem:[#allocation3 + $0x10] sm:$0xff] }
 0x254   :  { %1648 = vmatmul.bf16.gmra.mxu2 %v1560_v33  ;;  %v1384_v33 = vadd.f32 %v1383_v29, %v2883_v19 }
 0x255   :  { %v1513_v14 = vpop.f32.mrf.mxu1  ;;  %v1481_v2 = vpop.f32.mrf.mxu0 }
 0x256   :  { %v1514_v42 = vadd.f32 %v1513_v14, %v1465_v25  ;;  %v1386_v14 = vpop.f32.mrf.mxu2 }
 0x257   :  { %v1387_v19 = vadd.f32 %v1386_v14, %v2885_v23 }
 0x258   :  { %v1547_v48 = vmax.f32 %v1514_v42, 0.0  ;;  %v1432_v21 = vpop.f32.mrf.mxu3 }
 0x259   :  { %v1433_v35 = vadd.f32 %v1432_v21, %v1384_v33 }
 0x25b   :  { %v1482_v57 = vadd.f32 %v1481_v2, %v1433_v35 }
 0x25d   :  { %v1515_v24 = vpop.f32.mrf.mxu1  ;;  %v1484_v52 = vpop.f32.mrf.mxu0 }
 0x25e   :  { %v1516_v62 = vadd.f32 %v1515_v24, %v1467_v5  ;;  %v1388_v24 = vpop.f32.mrf.mxu2 }
 0x260   :  { %v1548_v17 = vmax.f32 %v1516_v62, 0.0  ;;  %v1435_v36 = vpop.f32.mrf.mxu3 }
 0x261   :  { %v1436_v11 = vadd.f32 %v1435_v36, %v1387_v19 }
 0x262   :  { %v1561_v45 = vpack.c.bf16 %v1548_v17, %v1547_v48  ;;  %v1389_v17 = vadd.f32 %v1388_v24, %v2888_v43  ;;  %v2250_v24 = vld [vmem:[#allocation3 + $0x20] sm:$0xff] }
 0x263   :  { %v1485_v51 = vadd.f32 %v1484_v52, %v1436_v11 }
 0x264   :  { %1653 = vmatmul.bf16.gmra.mxu2 %v1561_v45 }
 0x265   :  { %v1518_v8 = vpop.f32.mrf.mxu1  ;;  %v1486_v48 = vpop.f32.mrf.mxu0 }
 0x266   :  { %v1519_v53 = vadd.f32 %v1518_v8, %v1470_v20  ;;  %v1391_v8 = vpop.f32.mrf.mxu2 }
 0x268   :  { %v1549_v41 = vmax.f32 %v1519_v53, 0.0  ;;  %v1437_v56 = vpop.f32.mrf.mxu3 }
 0x269   :  { %v1438_v45 = vadd.f32 %v1437_v56, %v1389_v17  ;;  %v2251_v17 = vld [vmem:[#allocation3 + $0x28] sm:$0xff] }
 0x26b   :  { %v1487_v60 = vadd.f32 %v1486_v48, %v1438_v45 }
 0x26d   :  { %v1520_v18 = vpop.f32.mrf.mxu1  ;;  %v1489_v20 = vpop.f32.mrf.mxu0 }
 0x26e   :  { %v1521_v40 = vadd.f32 %v1520_v18, %v1472_v63  ;;  %v1392_v18 = vadd.f32 %v1391_v8, %v2890_v34  ;;  %v1393_v23 = vpop.f32.mrf.mxu2  ;;  %v2914_v34 = vld [vmem:[%s2944_s6] ss:$0 sm:$0xff]  ;;  %s2399_s6 = smov [#allocation11]  }
 0x26f   :  { %v1394_v43 = vadd.f32 %v1393_v23, %v2893_v55  ;;  %s1752_s25 = sshll.u32 %s2399_s6, 4  ;;  %s1753_s25 = int_to_ptr.vmem [resolvable:$true] %s1752_s25 }
 0x270   :  { %v1550_v39 = vmax.f32 %v1521_v40, 0.0  ;;  %v1440_v32 = vpop.f32.mrf.mxu3 }
 0x272   :  { %v1562_v26 = vpack.c.bf16 %v1550_v39, %v1549_v41  ;;  %v1441_v41 = vadd.f32 %v1440_v32, %v1392_v18 }
 0x274   :  { %1658 = vmatmul.bf16.gmra.mxu2 %v1562_v26  ;;  %v1490_v31 = vadd.f32 %v1489_v20, %v1441_v41 }
 0x275   :  { %v1523_v37 = vpop.f32.mrf.mxu1  ;;  %v1491_v39 = vpop.f32.mrf.mxu0 }
 0x276   :  { %v1524_v6 = vadd.f32 %v1523_v37, %v1475_v46 }
 0x278   :  { %v1551_v9 = vmax.f32 %v1524_v6, 0.0  ;;  %v1442_v40 = vpop.f32.mrf.mxu3  ;;  %v2246_v6 = vld [vmem:[#allocation3] sm:$0xff] }
 0x279   :  { %v1443_v26 = vadd.f32 %v1442_v40, %v1394_v43  ;;  %v2254_v43 = vld [vmem:[#allocation3 + $0x40] sm:$0xff] }
 0x27b   :  { %v1492_v12 = vadd.f32 %v1491_v39, %v1443_v26 }
 0x27d   :  { %v1525_v49 = vpop.f32.mrf.mxu1 }
 0x27e   :  { %v1526_v4 = vadd.f32 %v1525_v49, %v1477_v28 }
 0x280   :  { %v1552_v3 = vmax.f32 %v1526_v4, 0.0 }
 0x282   :  { %v1563_v13 = vpack.c.bf16 %v1552_v3, %v1551_v9  ;;  %v2247_v3 = vld [vmem:[#allocation3 + $0x8] sm:$0xff] }
 0x284   :  { %1663 = vmatmul.bf16.gmra.mxu2 %v1563_v13 }
 0x285   :  { %v1528_v27 = vpop.f32.mrf.mxu1 }
 0x286   :  { %v1529_v38 = vadd.f32 %v1528_v27, %v1480_v50 }
 0x288   :  { %v1553_v5 = vmax.f32 %v1529_v38, 0.0 }
 0x28d   :  { %v1530_v7 = vpop.f32.mrf.mxu1 }
 0x28e   :  { %v1531_v25 = vadd.f32 %v1530_v7, %v1482_v57  ;;  %v2249_v57 = vld [vmem:[#allocation3 + $0x18] sm:$0xff] }
 0x290   :  { %v1554_v42 = vmax.f32 %v1531_v25, 0.0 }
 0x292   :  { %v1564_v62 = vpack.c.bf16 %v1554_v42, %v1553_v5 }
 0x294   :  { %1668 = vmatmul.bf16.gmra.mxu2 %v1564_v62 }
 0x295   :  { %v1533_v58 = vpop.f32.mrf.mxu1 }
 0x296   :  { %v1534_v61 = vadd.f32 %v1533_v58, %v1485_v51 }
 0x298   :  { %v1555_v10 = vmax.f32 %v1534_v61, 0.0  ;;  %v2252_v61 = vld [vmem:[#allocation3 + $0x30] sm:$0xff] }
 0x29d   :  { %v1535_v59 = vpop.f32.mrf.mxu1 }
 0x29e   :  { %v1536_v16 = vadd.f32 %v1535_v59, %v1487_v60 }
 0x2a0   :  { %v1556_v63 = vmax.f32 %v1536_v16, 0.0 }
 0x2a2   :  { %v1565_v53 = vpack.c.bf16 %v1556_v63, %v1555_v10  ;;  %v2253_v63 = vld [vmem:[#allocation3 + $0x38] sm:$0xff] }
 0x2a4   :  { %1673 = vmatmul.bf16.gmra.mxu2 %v1565_v53 }
 0x2a5   :  { %v1538_v0 = vpop.f32.mrf.mxu1 }
 0x2a6   :  { %v1539_v37 = vadd.f32 %v1538_v0, %v1490_v31 }
 0x2a8   :  { %v1557_v15 = vmax.f32 %v1539_v37, 0.0  ;;  %v2255_v37 = vld [vmem:[#allocation3 + $0x48] sm:$0xff] }
 0x2ad   :  { %v1540_v44 = vpop.f32.mrf.mxu1 }
 0x2ae   :  { %v1541_v1 = vadd.f32 %v1540_v44, %v1492_v12 }
 0x2b0   :  { %v1558_v30 = vmax.f32 %v1541_v1, 0.0 }
 0x2b2   :  { %v1566_v47 = vpack.c.bf16 %v1558_v30, %v1557_v15 }
 0x2b4   :  { %1678 = vmatmul.bf16.gmra.mxu2 %v1566_v47 }
 0x2c7   :  { %v1644_v46 = vpop.f32.mrf.mxu2 }
 0x2c8   :  { %v1645_v55 = vadd.f32 %v2914_v34, %v1644_v46  ;;  %v2256_v46 = vld [vmem:[#allocation3 + $0x50] sm:$0xff] }
 0x2ca   :  { %v1684_v28 = vmax.f32 %v1645_v55, 0.0 }
 0x2cc   :  { %v1700_v49 = vadd.f32 %v2246_v6, %v1684_v28 }
 0x2ce   :  { %v1716_v29 = vmax.f32 %v1700_v49, 0.0 }
 0x2cf   :  { %v1646_v4 = vpop.f32.mrf.mxu2 }
 0x2d0   :  { %1732 = vst [vmem:[#allocation11] sm:$0xff] %v1716_v29  ;;  %v1647_v21 = vadd.f32 %v2914_v34, %v1646_v4  ;;  %v2257_v4 = vld [vmem:[#allocation3 + $0x58] sm:$0xff] }
 0x2d2   :  { %v1685_v9 = vmax.f32 %v1647_v21, 0.0 }
 0x2d4   :  { %v1701_v2 = vadd.f32 %v2247_v3, %v1685_v9 }
 0x2d6   :  { %v1717_v13 = vmax.f32 %v1701_v2, 0.0 }
 0x2d7   :  { %v1649_v27 = vpop.f32.mrf.mxu2 }
 0x2d8   :  { %1733 = vst [vmem:[#allocation11 + $0x8] sm:$0xff] %v1717_v13  ;;  %v1650_v22 = vadd.f32 %v2914_v34, %v1649_v27  ;;  %v2258_v27 = vld [vmem:[#allocation3 + $0x60] sm:$0xff] }
 0x2da   :  { %v1686_v33 = vmax.f32 %v1650_v22, 0.0 }
 0x2dc   :  { %v1702_v14 = vadd.f32 %v2248_v54, %v1686_v33 }
 0x2de   :  { %v1718_v36 = vmax.f32 %v1702_v14, 0.0 }
 0x2df   :  { %v1651_v35 = vpop.f32.mrf.mxu2 }
 0x2e0   :  { %1734 = vst [vmem:[#allocation11 + $0x10] sm:$0xff] %v1718_v36  ;;  %v1652_v50 = vadd.f32 %v2914_v34, %v1651_v35  ;;  %v2259_v35 = vld [vmem:[#allocation3 + $0x68] sm:$0xff] }
 0x2e2   :  { %v1687_v52 = vmax.f32 %v1652_v50, 0.0 }
 0x2e4   :  { %v1703_v38 = vadd.f32 %v2249_v57, %v1687_v52 }
 0x2e6   :  { %v1719_v7 = vmax.f32 %v1703_v38, 0.0 }
 0x2e7   :  { %v1654_v25 = vpop.f32.mrf.mxu2 }
 0x2e8   :  { %1735 = vst [vmem:[#allocation11 + $0x18] sm:$0xff] %v1719_v7  ;;  %v1655_v5 = vadd.f32 %v2914_v34, %v1654_v25  ;;  %v2260_v25 = vld [vmem:[#allocation3 + $0x70] sm:$0xff] }
 0x2ea   :  { %v1688_v42 = vmax.f32 %v1655_v5, 0.0 }
 0x2ec   :  { %v1704_v62 = vadd.f32 %v2250_v24, %v1688_v42 }
 0x2ee   :  { %v1720_v56 = vmax.f32 %v1704_v62, 0.0 }
 0x2ef   :  { %v1656_v48 = vpop.f32.mrf.mxu2 }
 0x2f0   :  { %1736 = vst [vmem:[#allocation11 + $0x20] sm:$0xff] %v1720_v56  ;;  %v1657_v58 = vadd.f32 %v2914_v34, %v1656_v48  ;;  %v2261_v48 = vld [vmem:[#allocation3 + $0x78] sm:$0xff] }
 0x2f2   :  { %v1689_v19 = vmax.f32 %v1657_v58, 0.0 }
 0x2f4   :  { %v1705_v11 = vadd.f32 %v2251_v17, %v1689_v19 }
 0x2f6   :  { %v1721_v45 = vmax.f32 %v1705_v11, 0.0 }
 0x2f7   :  { %v1659_v51 = vpop.f32.mrf.mxu2 }
 0x2f8   :  { %1737 = vst [vmem:[#allocation11 + $0x28] sm:$0xff] %v1721_v45  ;;  %v1660_v8 = vadd.f32 %v2914_v34, %v1659_v51 }
 0x2fa   :  { %v1690_v60 = vmax.f32 %v1660_v8, 0.0 }
 0x2fc   :  { %v1706_v32 = vadd.f32 %v2252_v61, %v1690_v60 }
 0x2fe   :  { %v1722_v59 = vmax.f32 %v1706_v32, 0.0 }
 0x2ff   :  { %v1661_v16 = vpop.f32.mrf.mxu2 }
 0x300   :  { %1738 = vst [vmem:[#allocation11 + $0x30] sm:$0xff] %v1722_v59  ;;  %v1662_v20 = vadd.f32 %v2914_v34, %v1661_v16 }
 0x302   :  { %v1691_v10 = vmax.f32 %v1662_v20, 0.0 }
 0x304   :  { %v1707_v53 = vadd.f32 %v2253_v63, %v1691_v10 }
 0x306   :  { %v1723_v0 = vmax.f32 %v1707_v53, 0.0 }
 0x307   :  { %v1664_v18 = vpop.f32.mrf.mxu2 }
 0x308   :  { %1739 = vst [vmem:[#allocation11 + $0x38] sm:$0xff] %v1723_v0  ;;  %v1665_v23 = vadd.f32 %v2914_v34, %v1664_v18 }
 0x30a   :  { %v1692_v40 = vmax.f32 %v1665_v23, 0.0 }
 0x30c   :  { %v1708_v41 = vadd.f32 %v2254_v43, %v1692_v40 }
 0x30e   :  { %v1724_v39 = vmax.f32 %v1708_v41, 0.0 }
 0x30f   :  { %v1666_v26 = vpop.f32.mrf.mxu2 }
 0x310   :  { %1740 = vst [vmem:[#allocation11 + $0x40] sm:$0xff] %v1724_v39  ;;  %v1667_v31 = vadd.f32 %v2914_v34, %v1666_v26 }
 0x312   :  { %v1693_v12 = vmax.f32 %v1667_v31, 0.0 }
 0x314   :  { %v1709_v44 = vadd.f32 %v2255_v37, %v1693_v12 }
 0x316   :  { %v1725_v1 = vmax.f32 %v1709_v44, 0.0 }
 0x317   :  { %v1669_v15 = vpop.f32.mrf.mxu2 }
 0x318   :  { %1741 = vst [vmem:[#allocation11 + $0x48] sm:$0xff] %v1725_v1  ;;  %v1670_v30 = vadd.f32 %v2914_v34, %v1669_v15 }
 0x31a   :  { %v1694_v47 = vmax.f32 %v1670_v30, 0.0 }
 0x31c   :  { %v1710_v55 = vadd.f32 %v2256_v46, %v1694_v47 }
 0x31e   :  { %v1726_v28 = vmax.f32 %v1710_v55, 0.0 }
 0x31f   :  { %v1671_v6 = vpop.f32.mrf.mxu2 }
 0x320   :  { %1742 = vst [vmem:[#allocation11 + $0x50] sm:$0xff] %v1726_v28  ;;  %v1672_v49 = vadd.f32 %v2914_v34, %v1671_v6 }
 0x322   :  { %v1695_v29 = vmax.f32 %v1672_v49, 0.0 }
 0x324   :  { %v1711_v21 = vadd.f32 %v2257_v4, %v1695_v29 }
 0x326   :  { %v1727_v9 = vmax.f32 %v1711_v21, 0.0 }
 0x327   :  { %v1674_v3 = vpop.f32.mrf.mxu2 }
 0x328   :  { %1743 = vst [vmem:[#allocation11 + $0x58] sm:$0xff] %v1727_v9  ;;  %v1675_v2 = vadd.f32 %v2914_v34, %v1674_v3 }
 0x32a   :  { %v1696_v13 = vmax.f32 %v1675_v2, 0.0 }
 0x32c   :  { %v1712_v22 = vadd.f32 %v2258_v27, %v1696_v13 }
 0x32e   :  { %v1728_v33 = vmax.f32 %v1712_v22, 0.0 }
 0x32f   :  { %v1676_v54 = vpop.f32.mrf.mxu2 }
 0x330   :  { %1744 = vst [vmem:[#allocation11 + $0x60] sm:$0xff] %v1728_v33  ;;  %v1677_v14 = vadd.f32 %v2914_v34, %v1676_v54 }
 0x332   :  { %v1697_v36 = vmax.f32 %v1677_v14, 0.0 }
 0x334   :  { %v1713_v50 = vadd.f32 %v2259_v35, %v1697_v36 }
 0x336   :  { %v1729_v52 = vmax.f32 %v1713_v50, 0.0 }
 0x337   :  { %v1679_v57 = vpop.f32.mrf.mxu2 }
 0x338   :  { %1745 = vst [vmem:[#allocation11 + $0x68] sm:$0xff] %v1729_v52  ;;  %v1680_v38 = vadd.f32 %v2914_v34, %v1679_v57 }
 0x33a   :  { %v1698_v7 = vmax.f32 %v1680_v38, 0.0 }
 0x33c   :  { %v1714_v5 = vadd.f32 %v2260_v25, %v1698_v7 }
 0x33e   :  { %v1730_v42 = vmax.f32 %v1714_v5, 0.0 }
 0x33f   :  { %v1681_v24 = vpop.f32.mrf.mxu2 }
 0x340   :  { %1746 = vst [vmem:[#allocation11 + $0x70] sm:$0xff] %v1730_v42  ;;  %v1682_v62 = vadd.f32 %v2914_v34, %v1681_v24 }
 0x342   :  { %v1699_v56 = vmax.f32 %v1682_v62, 0.0 }
 0x344   :  { %v1715_v58 = vadd.f32 %v2261_v48, %v1699_v56 }
 0x346   :  { %v1731_v19 = vmax.f32 %v1715_v58, 0.0 }
 0x348   :  { %1747 = vst [vmem:[#allocation11 + $0x78] sm:$0xff] %v1731_v19 }
 0x349   :  { %1760 = dma.vmem_to_hbm [thread:$0]  %s1753_s25, 2048, %s1755_s28, [#allocation5], %s2394_s13, %s2394_s13, %s2395_s14  }
 0x34a   :  { %2388 = dma.done.wait [#allocation5], 2048  }
 0x34b   :  { %2389 = vsyncadd [#allocation5], 4294965248 }
 0x34c   :  { %1765 = vsyncpa [#allocation4], 1 }
 0x34d   :  { %1766 = vsyncpa [#allocation7], 1 }
 0x34e   :  { %1767 = vsyncpa [#allocation10], 1 }
 0x34f   :  { %1768 = vsyncpa [#allocation5], 1 }

</bundles_post_ra>
